<compile_context>
chip_gen: v7x
topology: tpu7x:2x2x1
jax: 0.10.0
libtpu: 0.0.40
codegen_flags: <defaults>
</compile_context>

<pallas_src>
import jax
import jax.numpy as jnp
from jax import lax
from jax.experimental import pallas as pl
from jax.experimental.pallas import tpu as pltpu

HIDDEN = 50
INPUT = 1            # == sequence_length in the PyTorch module (used as input_size)
HP = 128             # hidden dim padded to one full lane group
GP = 4 * HP          # fused, lane-aligned gate width (i, f, g, o at offsets g*128)


def lstm_linear_kernel(x_ref, wih_ref, whh_ref, b_ref, wl_ref, bl_ref,
                       out_ref, xwb_sc):
    """Whole-sequence LSTM + Linear in one kernel invocation.

    x_ref   : (T, B, 1)   time-major input
    wih_ref : (1, GP)     fused input weight, gate g at columns [g*128, g*128+50)
    whh_ref : (HP, GP)    fused recurrent weight (zero-padded rows/cols)
    b_ref   : (1, GP)     b_ih + b_hh, fused & padded
    wl_ref  : (1, HP)     Linear weight row (zero-padded)
    bl_ref  : (1, 1)      Linear bias (SMEM scalar)
    out_ref : (B, T)      y[b, t]
    xwb_sc  : (T, B, GP)  VMEM scratch: x*W_ih + bias for every timestep
    """
    T, B, _ = x_ref.shape

    # Prologue: input contribution + bias for all timesteps in one vectorized op
    # (input_size == 1 -> broadcast multiply). Off the serial h/c chain.
    xwb_sc[...] = x_ref[...] * wih_ref[...] + b_ref[...]

    wl = wl_ref[...]            # (1, HP)
    bl = bl_ref[0, 0]
    # Loop-invariant lane ids for the masked output accumulate (hoisted:
    # broadcasts are not CSE'd if emitted inside the loop).
    col_ids = lax.broadcasted_iota(jnp.int32, (B, T), 1)

    def step(t, carry):
        h, c, y_acc = carry
        # One fused (B, HP) @ (HP, GP) MXU matmul per timestep; gates are
        # whole-vreg, lane-aligned slices of the result.
        pre = xwb_sc[t] + jnp.dot(h, whh_ref[...],
                                  preferred_element_type=jnp.float32)
        i = jax.nn.sigmoid(pre[:, 0 * HP:1 * HP])
        f = jax.nn.sigmoid(pre[:, 1 * HP:2 * HP])
        g = jnp.tanh(pre[:, 2 * HP:3 * HP])
        o = jax.nn.sigmoid(pre[:, 3 * HP:4 * HP])
        c_new = f * c + i * g
        h_new = o * jnp.tanh(c_new)

        # Linear(H -> 1) + masked lane-select into the (B, T) accumulator.
        # Nothing downstream on the recurrence depends on this: pure filler
        # work off the critical chain (padded lanes of h_new are exactly 0).
        y_t = jnp.sum(h_new * wl, axis=-1, keepdims=True) + bl     # (B, 1)
        y_acc = jnp.where(col_ids == t, y_t, y_acc)
        return (h_new, c_new, y_acc)

    h0 = jnp.zeros((B, HP), jnp.float32)
    c0 = jnp.zeros((B, HP), jnp.float32)
    y0 = jnp.zeros((B, T), jnp.float32)
    _, _, y = lax.fori_loop(0, T, step, (h0, c0, y0), unroll=True)

    out_ref[...] = y.astype(out_ref.dtype)


def lstm_linear(x, packed_params):
    """x: (B, T, 1) float32 (batch_first, like the PyTorch module)."""
    wih_p, whh_p, b_p, wl_p, bl = packed_params
    B, T, _ = x.shape

    x_tm = jnp.transpose(x, (1, 0, 2))                # (T, B, 1) time-major

    y_bt = pl.pallas_call(
        lstm_linear_kernel,
        out_shape=jax.ShapeDtypeStruct((B, T), jnp.float32),
        in_specs=[
            pl.BlockSpec(memory_space=pltpu.MemorySpace.VMEM),   # x (time-major)
            pl.BlockSpec(memory_space=pltpu.MemorySpace.VMEM),   # fused W_ih (padded)
            pl.BlockSpec(memory_space=pltpu.MemorySpace.VMEM),   # fused W_hh (padded)
            pl.BlockSpec(memory_space=pltpu.MemorySpace.VMEM),   # fused bias (padded)
            pl.BlockSpec(memory_space=pltpu.MemorySpace.VMEM),   # Linear weight row (padded)
            pl.BlockSpec(memory_space=pltpu.MemorySpace.SMEM),   # Linear bias scalar
        ],
        out_specs=pl.BlockSpec(memory_space=pltpu.MemorySpace.VMEM),
        scratch_shapes=[pltpu.VMEM((T, B, GP), jnp.float32)],    # x*W_ih + b, all T
    )(x_tm, wih_p, whh_p, b_p, wl_p, bl)

    return y_bt[..., None]                            # (B, T, 1)


def init_params(key):
    """Deterministic PyTorch-style uniform(-1/sqrt(H), 1/sqrt(H)) init.

    Layout: w_ih (4, I, H), w_hh (4, H, H), b = b_ih + b_hh (4, 1, H),
    gate order i, f, g, o (PyTorch's nn.LSTM order); wl (1, H), bl (1, 1).
    """
    k = 1.0 / float(jnp.sqrt(jnp.float32(HIDDEN)))
    keys = jax.random.split(key, 6)
    w_ih = jax.random.uniform(keys[0], (4, INPUT, HIDDEN), jnp.float32, -k, k)
    w_hh = jax.random.uniform(keys[1], (4, HIDDEN, HIDDEN), jnp.float32, -k, k)
    b_ih = jax.random.uniform(keys[2], (4, 1, HIDDEN), jnp.float32, -k, k)
    b_hh = jax.random.uniform(keys[3], (4, 1, HIDDEN), jnp.float32, -k, k)
    b = b_ih + b_hh
    wl = jax.random.uniform(keys[4], (1, HIDDEN), jnp.float32, -k, k)
    bl = jax.random.uniform(keys[5], (1, 1), jnp.float32, -k, k)
    return w_ih, w_hh, b, wl, bl


def pack_params(params):
    """One-time (init-time) fuse + lane-align of the model parameters.

    Gate g occupies columns [g*128, g*128+H); all padded rows/cols are zero,
    which keeps the padded lanes of h/c exactly zero inside the kernel.
    """
    w_ih, w_hh, b, wl, bl = params
    wih_p = jnp.zeros((1, GP), jnp.float32)
    whh_p = jnp.zeros((HP, GP), jnp.float32)
    b_p = jnp.zeros((1, GP), jnp.float32)
    wl_p = jnp.zeros((1, HP), jnp.float32)
    for g in range(4):
        wih_p = wih_p.at[:, g * HP:g * HP + HIDDEN].set(w_ih[g])
        whh_p = whh_p.at[:HIDDEN, g * HP:g * HP + HIDDEN].set(w_hh[g])
        b_p = b_p.at[:, g * HP:g * HP + HIDDEN].set(b[g])
    wl_p = wl_p.at[:, :HIDDEN].set(wl)
    return wih_p, whh_p, b_p, wl_p, bl


def reference(x, params):
    """Pure-JAX reference (same math as nn.LSTM + nn.Linear, float32)."""
    w_ih, w_hh, b, wl, bl = params
    B, T, _ = x.shape
    H = HIDDEN
    # Fused gate layout (i, f, g, o) — mathematically identical to per-gate.
    w_ih_cat = jnp.transpose(w_ih, (1, 0, 2)).reshape(1, 4 * H)    # (1, 4H)
    w_hh_cat = jnp.transpose(w_hh, (1, 0, 2)).reshape(H, 4 * H)    # (H, 4H)
    b_cat = jnp.transpose(b, (1, 0, 2)).reshape(1, 4 * H)          # (1, 4H)

    def step(carry, x_t):                       # x_t: (B, 1)
        h, c = carry
        # input_size == 1  =>  x_t @ W_ih^T  ==  x_t * w_ih_cat
        pre = x_t * w_ih_cat + h @ w_hh_cat + b_cat
        i = jax.nn.sigmoid(pre[:, 0 * H:1 * H])
        f = jax.nn.sigmoid(pre[:, 1 * H:2 * H])
        g_ = jnp.tanh(pre[:, 2 * H:3 * H])
        o = jax.nn.sigmoid(pre[:, 3 * H:4 * H])
        c = f * c + i * g_
        h = o * jnp.tanh(c)
        y = jnp.sum(h * wl, axis=-1, keepdims=True) + bl           # Linear(H->1)
        return (h, c), y

    h0 = jnp.zeros((B, H), jnp.float32)
    c0 = jnp.zeros((B, H), jnp.float32)
    _, ys = lax.scan(step, (h0, c0), jnp.transpose(x, (1, 0, 2)))
    return jnp.transpose(ys, (1, 0, 2))          # (B, T, 1)


if __name__ == "__main__":
    key = jax.random.PRNGKey(0)
    kp, kx = jax.random.split(key)
    params = init_params(kp)
    packed = pack_params(params)        # once, at parameter-load time

    B, T = 2, 8
    x = jax.random.normal(kx, (B, T, INPUT), jnp.float32)

    out = jax.block_until_ready(lstm_linear(x, packed))
    ref = jax.block_until_ready(reference(x, params))

    assert out.shape == (B, T, 1), out.shape
    max_err = float(jnp.max(jnp.abs(out - ref)))
    assert jnp.allclose(out, ref, atol=1e-4, rtol=1e-4), f"max abs err = {max_err}"

    print("KERNEL_OK")
</pallas_src>

<mosaic_0001>
module attributes {stable_mosaic.version = 11 : i64} {
  func.func @lstm_linear_kernel(%arg0: memref<8x2x1xf32, #tpu.memory_space<vmem>>, %arg1: memref<1x512xf32, #tpu.memory_space<vmem>>, %arg2: memref<128x512xf32, #tpu.memory_space<vmem>>, %arg3: memref<1x512xf32, #tpu.memory_space<vmem>>, %arg4: memref<1x128xf32, #tpu.memory_space<vmem>>, %arg5: memref<1x1xf32, #tpu.memory_space<smem>>, %arg6: memref<2x8xf32, #tpu.memory_space<vmem>>, %arg7: memref<8x2x512xf32, #tpu.memory_space<vmem>>) attributes {dimension_semantics = [], scalar_prefetch = 0 : i64, scratch_operands = 1 : i64, tpu.core_type = #tpu.core_type<tc>} {
    %c0 = arith.constant 0 : index
    %c0_0 = arith.constant 0 : index
    %c0_1 = arith.constant 0 : index
    %0 = vector.load %arg0[%c0, %c0_0, %c0_1] : memref<8x2x1xf32, #tpu.memory_space<vmem>>, vector<8x2x1xf32>
    %c0_2 = arith.constant 0 : index
    %c0_3 = arith.constant 0 : index
    %1 = vector.load %arg1[%c0_2, %c0_3] : memref<1x512xf32, #tpu.memory_space<vmem>>, vector<1x512xf32>
    %2 = vector.shape_cast %1 : vector<1x512xf32> to vector<1x1x512xf32>
    %3 = vector.broadcast %0 : vector<8x2x1xf32> to vector<8x2x512xf32>
    %4 = vector.broadcast %2 : vector<1x1x512xf32> to vector<8x2x512xf32>
    %5 = arith.mulf %3, %4 : vector<8x2x512xf32>
    %c0_4 = arith.constant 0 : index
    %c0_5 = arith.constant 0 : index
    %6 = vector.load %arg3[%c0_4, %c0_5] : memref<1x512xf32, #tpu.memory_space<vmem>>, vector<1x512xf32>
    %7 = vector.shape_cast %6 : vector<1x512xf32> to vector<1x1x512xf32>
    %8 = vector.broadcast %7 : vector<1x1x512xf32> to vector<8x2x512xf32>
    %9 = arith.addf %5, %8 : vector<8x2x512xf32>
    %c0_6 = arith.constant 0 : index
    %c0_7 = arith.constant 0 : index
    %c0_8 = arith.constant 0 : index
    %10 = vector.load %arg7[%c0_6, %c0_7, %c0_8] : memref<8x2x512xf32, #tpu.memory_space<vmem>>, vector<8x2x512xf32>
    tpu.vector_store %arg7[%c0_6, %c0_7, %c0_8], %9 {strides = array<i32>} : memref<8x2x512xf32, #tpu.memory_space<vmem>>, vector<8x2x512xf32>,
    %c0_9 = arith.constant 0 : index
    %c0_10 = arith.constant 0 : index
    %11 = vector.load %arg4[%c0_9, %c0_10] : memref<1x128xf32, #tpu.memory_space<vmem>>, vector<1x128xf32>
    %c0_11 = arith.constant 0 : index
    %c0_12 = arith.constant 0 : index
    %12 = memref.load %arg5[%c0_11, %c0_12] : memref<1x1xf32, #tpu.memory_space<smem>>
    %13 = tpu.iota {dimensions = array<i32: 1>} : vector<2x8xi32>
    %cst = arith.constant 0.000000e+00 : f32
    %14 = vector.broadcast %cst : f32 to vector<2x128xf32>
    %cst_13 = arith.constant 0.000000e+00 : f32
    %15 = vector.broadcast %cst_13 : f32 to vector<2x128xf32>
    %cst_14 = arith.constant 0.000000e+00 : f32
    %16 = vector.broadcast %cst_14 : f32 to vector<2x8xf32>
    %c0_i32 = arith.constant 0 : i32
    %17 = arith.index_cast %c0_i32 : i32 to index
    %c0_15 = arith.constant 0 : index
    %c0_16 = arith.constant 0 : index
    %18 = vector.load %arg7[%17, %c0_15, %c0_16] : memref<8x2x512xf32, #tpu.memory_space<vmem>>, vector<1x2x512xf32>
    %19 = vector.shape_cast %18 : vector<1x2x512xf32> to vector<2x512xf32>
    %c0_17 = arith.constant 0 : index
    %c0_18 = arith.constant 0 : index
    %20 = vector.load %arg2[%c0_17, %c0_18] : memref<128x512xf32, #tpu.memory_space<vmem>>, vector<128x512xf32>
    %cst_19 = arith.constant dense<0.000000e+00> : vector<2x512xf32>
    %21 = tpu.matmul %14, %20, %cst_19 {dimension_numbers = #tpu.dot_dimension_numbers<[1], [0], [0], [1], [0, 0, 1, 1], [], []>} : vector<2x128xf32>, vector<128x512xf32>, vector<2x512xf32> -> vector<2x512xf32>
    %22 = arith.addf %19, %21 : vector<2x512xf32>
    %23 = vector.extract_strided_slice %22 {offsets = [0, 0], sizes = [2, 128], strides = [1, 1]} : vector<2x512xf32> to vector<2x128xf32>
    %24 = arith.negf %23 : vector<2x128xf32>
    %25 = math.exp %24 : vector<2x128xf32>
    %cst_20 = arith.constant 1.000000e+00 : f32
    %26 = vector.broadcast %cst_20 : f32 to vector<2x128xf32>
    %27 = arith.addf %26, %25 : vector<2x128xf32>
    %28 = arith.divf %26, %27 : vector<2x128xf32>
    %29 = vector.extract_strided_slice %22 {offsets = [0, 128], sizes = [2, 128], strides = [1, 1]} : vector<2x512xf32> to vector<2x128xf32>
    %30 = arith.negf %29 : vector<2x128xf32>
    %31 = math.exp %30 : vector<2x128xf32>
    %cst_21 = arith.constant 1.000000e+00 : f32
    %32 = vector.broadcast %cst_21 : f32 to vector<2x128xf32>
    %33 = arith.addf %32, %31 : vector<2x128xf32>
    %34 = arith.divf %32, %33 : vector<2x128xf32>
    %35 = vector.extract_strided_slice %22 {offsets = [0, 256], sizes = [2, 128], strides = [1, 1]} : vector<2x512xf32> to vector<2x128xf32>
    %36 = math.tanh %35 : vector<2x128xf32>
    %37 = vector.extract_strided_slice %22 {offsets = [0, 384], sizes = [2, 128], strides = [1, 1]} : vector<2x512xf32> to vector<2x128xf32>
    %38 = arith.negf %37 : vector<2x128xf32>
    %39 = math.exp %38 : vector<2x128xf32>
    %cst_22 = arith.constant 1.000000e+00 : f32
    %40 = vector.broadcast %cst_22 : f32 to vector<2x128xf32>
    %41 = arith.addf %40, %39 : vector<2x128xf32>
    %42 = arith.divf %40, %41 : vector<2x128xf32>
    %43 = arith.mulf %34, %15 : vector<2x128xf32>
    %44 = arith.mulf %28, %36 : vector<2x128xf32>
    %45 = arith.addf %43, %44 : vector<2x128xf32>
    %46 = math.tanh %45 : vector<2x128xf32>
    %47 = arith.mulf %42, %46 : vector<2x128xf32>
    %48 = vector.broadcast %11 : vector<1x128xf32> to vector<2x128xf32>
    %49 = arith.mulf %47, %48 : vector<2x128xf32>
    %cst_23 = arith.constant dense<0.000000e+00> : vector<2xf32>
    %50 = vector.multi_reduction <add>, %49, %cst_23 [1] : vector<2x128xf32> to vector<2xf32>
    %51 = vector.shape_cast %50 : vector<2xf32> to vector<2x1xf32>
    %52 = vector.broadcast %12 : f32 to vector<2x1xf32>
    %53 = arith.addf %51, %52 : vector<2x1xf32>
    %54 = vector.broadcast %c0_i32 : i32 to vector<2x8xi32>
    %55 = arith.cmpi eq, %13, %54 : vector<2x8xi32>
    %56 = vector.shape_cast %53 : vector<2x1xf32> to vector<2x1xf32>
    %57 = vector.broadcast %56 : vector<2x1xf32> to vector<2x8xf32>
    %58 = arith.select %55, %57, %16 : vector<2x8xi1>, vector<2x8xf32>
    %c1_i32 = arith.constant 1 : i32
    %59 = arith.index_cast %c1_i32 : i32 to index
    %c0_24 = arith.constant 0 : index
    %c0_25 = arith.constant 0 : index
    %60 = vector.load %arg7[%59, %c0_24, %c0_25] : memref<8x2x512xf32, #tpu.memory_space<vmem>>, vector<1x2x512xf32>
    %61 = vector.shape_cast %60 : vector<1x2x512xf32> to vector<2x512xf32>
    %c0_26 = arith.constant 0 : index
    %c0_27 = arith.constant 0 : index
    %62 = vector.load %arg2[%c0_26, %c0_27] : memref<128x512xf32, #tpu.memory_space<vmem>>, vector<128x512xf32>
    %cst_28 = arith.constant dense<0.000000e+00> : vector<2x512xf32>
    %63 = tpu.matmul %47, %62, %cst_28 {dimension_numbers = #tpu.dot_dimension_numbers<[1], [0], [0], [1], [0, 0, 1, 1], [], []>} : vector<2x128xf32>, vector<128x512xf32>, vector<2x512xf32> -> vector<2x512xf32>
    %64 = arith.addf %61, %63 : vector<2x512xf32>
    %65 = vector.extract_strided_slice %64 {offsets = [0, 0], sizes = [2, 128], strides = [1, 1]} : vector<2x512xf32> to vector<2x128xf32>
    %66 = arith.negf %65 : vector<2x128xf32>
    %67 = math.exp %66 : vector<2x128xf32>
    %cst_29 = arith.constant 1.000000e+00 : f32
    %68 = vector.broadcast %cst_29 : f32 to vector<2x128xf32>
    %69 = arith.addf %68, %67 : vector<2x128xf32>
    %70 = arith.divf %68, %69 : vector<2x128xf32>
    %71 = vector.extract_strided_slice %64 {offsets = [0, 128], sizes = [2, 128], strides = [1, 1]} : vector<2x512xf32> to vector<2x128xf32>
    %72 = arith.negf %71 : vector<2x128xf32>
    %73 = math.exp %72 : vector<2x128xf32>
    %cst_30 = arith.constant 1.000000e+00 : f32
    %74 = vector.broadcast %cst_30 : f32 to vector<2x128xf32>
    %75 = arith.addf %74, %73 : vector<2x128xf32>
    %76 = arith.divf %74, %75 : vector<2x128xf32>
    %77 = vector.extract_strided_slice %64 {offsets = [0, 256], sizes = [2, 128], strides = [1, 1]} : vector<2x512xf32> to vector<2x128xf32>
    %78 = math.tanh %77 : vector<2x128xf32>
    %79 = vector.extract_strided_slice %64 {offsets = [0, 384], sizes = [2, 128], strides = [1, 1]} : vector<2x512xf32> to vector<2x128xf32>
    %80 = arith.negf %79 : vector<2x128xf32>
    %81 = math.exp %80 : vector<2x128xf32>
    %cst_31 = arith.constant 1.000000e+00 : f32
    %82 = vector.broadcast %cst_31 : f32 to vector<2x128xf32>
    %83 = arith.addf %82, %81 : vector<2x128xf32>
    %84 = arith.divf %82, %83 : vector<2x128xf32>
    %85 = arith.mulf %76, %45 : vector<2x128xf32>
    %86 = arith.mulf %70, %78 : vector<2x128xf32>
    %87 = arith.addf %85, %86 : vector<2x128xf32>
    %88 = math.tanh %87 : vector<2x128xf32>
    %89 = arith.mulf %84, %88 : vector<2x128xf32>
    %90 = vector.broadcast %11 : vector<1x128xf32> to vector<2x128xf32>
    %91 = arith.mulf %89, %90 : vector<2x128xf32>
    %cst_32 = arith.constant dense<0.000000e+00> : vector<2xf32>
    %92 = vector.multi_reduction <add>, %91, %cst_32 [1] : vector<2x128xf32> to vector<2xf32>
    %93 = vector.shape_cast %92 : vector<2xf32> to vector<2x1xf32>
    %94 = vector.broadcast %12 : f32 to vector<2x1xf32>
    %95 = arith.addf %93, %94 : vector<2x1xf32>
    %96 = vector.broadcast %c1_i32 : i32 to vector<2x8xi32>
    %97 = arith.cmpi eq, %13, %96 : vector<2x8xi32>
    %98 = vector.shape_cast %95 : vector<2x1xf32> to vector<2x1xf32>
    %99 = vector.broadcast %98 : vector<2x1xf32> to vector<2x8xf32>
    %100 = arith.select %97, %99, %58 : vector<2x8xi1>, vector<2x8xf32>
    %c2_i32 = arith.constant 2 : i32
    %101 = arith.index_cast %c2_i32 : i32 to index
    %c0_33 = arith.constant 0 : index
    %c0_34 = arith.constant 0 : index
    %102 = vector.load %arg7[%101, %c0_33, %c0_34] : memref<8x2x512xf32, #tpu.memory_space<vmem>>, vector<1x2x512xf32>
    %103 = vector.shape_cast %102 : vector<1x2x512xf32> to vector<2x512xf32>
    %c0_35 = arith.constant 0 : index
    %c0_36 = arith.constant 0 : index
    %104 = vector.load %arg2[%c0_35, %c0_36] : memref<128x512xf32, #tpu.memory_space<vmem>>, vector<128x512xf32>
    %cst_37 = arith.constant dense<0.000000e+00> : vector<2x512xf32>
    %105 = tpu.matmul %89, %104, %cst_37 {dimension_numbers = #tpu.dot_dimension_numbers<[1], [0], [0], [1], [0, 0, 1, 1], [], []>} : vector<2x128xf32>, vector<128x512xf32>, vector<2x512xf32> -> vector<2x512xf32>
    %106 = arith.addf %103, %105 : vector<2x512xf32>
    %107 = vector.extract_strided_slice %106 {offsets = [0, 0], sizes = [2, 128], strides = [1, 1]} : vector<2x512xf32> to vector<2x128xf32>
    %108 = arith.negf %107 : vector<2x128xf32>
    %109 = math.exp %108 : vector<2x128xf32>
    %cst_38 = arith.constant 1.000000e+00 : f32
    %110 = vector.broadcast %cst_38 : f32 to vector<2x128xf32>
    %111 = arith.addf %110, %109 : vector<2x128xf32>
    %112 = arith.divf %110, %111 : vector<2x128xf32>
    %113 = vector.extract_strided_slice %106 {offsets = [0, 128], sizes = [2, 128], strides = [1, 1]} : vector<2x512xf32> to vector<2x128xf32>
    %114 = arith.negf %113 : vector<2x128xf32>
    %115 = math.exp %114 : vector<2x128xf32>
    %cst_39 = arith.constant 1.000000e+00 : f32
    %116 = vector.broadcast %cst_39 : f32 to vector<2x128xf32>
    %117 = arith.addf %116, %115 : vector<2x128xf32>
    %118 = arith.divf %116, %117 : vector<2x128xf32>
    %119 = vector.extract_strided_slice %106 {offsets = [0, 256], sizes = [2, 128], strides = [1, 1]} : vector<2x512xf32> to vector<2x128xf32>
    %120 = math.tanh %119 : vector<2x128xf32>
    %121 = vector.extract_strided_slice %106 {offsets = [0, 384], sizes = [2, 128], strides = [1, 1]} : vector<2x512xf32> to vector<2x128xf32>
    %122 = arith.negf %121 : vector<2x128xf32>
    %123 = math.exp %122 : vector<2x128xf32>
    %cst_40 = arith.constant 1.000000e+00 : f32
    %124 = vector.broadcast %cst_40 : f32 to vector<2x128xf32>
    %125 = arith.addf %124, %123 : vector<2x128xf32>
    %126 = arith.divf %124, %125 : vector<2x128xf32>
    %127 = arith.mulf %118, %87 : vector<2x128xf32>
    %128 = arith.mulf %112, %120 : vector<2x128xf32>
    %129 = arith.addf %127, %128 : vector<2x128xf32>
    %130 = math.tanh %129 : vector<2x128xf32>
    %131 = arith.mulf %126, %130 : vector<2x128xf32>
    %132 = vector.broadcast %11 : vector<1x128xf32> to vector<2x128xf32>
    %133 = arith.mulf %131, %132 : vector<2x128xf32>
    %cst_41 = arith.constant dense<0.000000e+00> : vector<2xf32>
    %134 = vector.multi_reduction <add>, %133, %cst_41 [1] : vector<2x128xf32> to vector<2xf32>
    %135 = vector.shape_cast %134 : vector<2xf32> to vector<2x1xf32>
    %136 = vector.broadcast %12 : f32 to vector<2x1xf32>
    %137 = arith.addf %135, %136 : vector<2x1xf32>
    %138 = vector.broadcast %c2_i32 : i32 to vector<2x8xi32>
    %139 = arith.cmpi eq, %13, %138 : vector<2x8xi32>
    %140 = vector.shape_cast %137 : vector<2x1xf32> to vector<2x1xf32>
    %141 = vector.broadcast %140 : vector<2x1xf32> to vector<2x8xf32>
    %142 = arith.select %139, %141, %100 : vector<2x8xi1>, vector<2x8xf32>
    %c3_i32 = arith.constant 3 : i32
    %143 = arith.index_cast %c3_i32 : i32 to index
    %c0_42 = arith.constant 0 : index
    %c0_43 = arith.constant 0 : index
    %144 = vector.load %arg7[%143, %c0_42, %c0_43] : memref<8x2x512xf32, #tpu.memory_space<vmem>>, vector<1x2x512xf32>
    %145 = vector.shape_cast %144 : vector<1x2x512xf32> to vector<2x512xf32>
    %c0_44 = arith.constant 0 : index
    %c0_45 = arith.constant 0 : index
    %146 = vector.load %arg2[%c0_44, %c0_45] : memref<128x512xf32, #tpu.memory_space<vmem>>, vector<128x512xf32>
    %cst_46 = arith.constant dense<0.000000e+00> : vector<2x512xf32>
    %147 = tpu.matmul %131, %146, %cst_46 {dimension_numbers = #tpu.dot_dimension_numbers<[1], [0], [0], [1], [0, 0, 1, 1], [], []>} : vector<2x128xf32>, vector<128x512xf32>, vector<2x512xf32> -> vector<2x512xf32>
    %148 = arith.addf %145, %147 : vector<2x512xf32>
    %149 = vector.extract_strided_slice %148 {offsets = [0, 0], sizes = [2, 128], strides = [1, 1]} : vector<2x512xf32> to vector<2x128xf32>
    %150 = arith.negf %149 : vector<2x128xf32>
    %151 = math.exp %150 : vector<2x128xf32>
    %cst_47 = arith.constant 1.000000e+00 : f32
    %152 = vector.broadcast %cst_47 : f32 to vector<2x128xf32>
    %153 = arith.addf %152, %151 : vector<2x128xf32>
    %154 = arith.divf %152, %153 : vector<2x128xf32>
    %155 = vector.extract_strided_slice %148 {offsets = [0, 128], sizes = [2, 128], strides = [1, 1]} : vector<2x512xf32> to vector<2x128xf32>
    %156 = arith.negf %155 : vector<2x128xf32>
    %157 = math.exp %156 : vector<2x128xf32>
    %cst_48 = arith.constant 1.000000e+00 : f32
    %158 = vector.broadcast %cst_48 : f32 to vector<2x128xf32>
    %159 = arith.addf %158, %157 : vector<2x128xf32>
    %160 = arith.divf %158, %159 : vector<2x128xf32>
    %161 = vector.extract_strided_slice %148 {offsets = [0, 256], sizes = [2, 128], strides = [1, 1]} : vector<2x512xf32> to vector<2x128xf32>
    %162 = math.tanh %161 : vector<2x128xf32>
    %163 = vector.extract_strided_slice %148 {offsets = [0, 384], sizes = [2, 128], strides = [1, 1]} : vector<2x512xf32> to vector<2x128xf32>
    %164 = arith.negf %163 : vector<2x128xf32>
    %165 = math.exp %164 : vector<2x128xf32>
    %cst_49 = arith.constant 1.000000e+00 : f32
    %166 = vector.broadcast %cst_49 : f32 to vector<2x128xf32>
    %167 = arith.addf %166, %165 : vector<2x128xf32>
    %168 = arith.divf %166, %167 : vector<2x128xf32>
    %169 = arith.mulf %160, %129 : vector<2x128xf32>
    %170 = arith.mulf %154, %162 : vector<2x128xf32>
    %171 = arith.addf %169, %170 : vector<2x128xf32>
    %172 = math.tanh %171 : vector<2x128xf32>
    %173 = arith.mulf %168, %172 : vector<2x128xf32>
    %174 = vector.broadcast %11 : vector<1x128xf32> to vector<2x128xf32>
    %175 = arith.mulf %173, %174 : vector<2x128xf32>
    %cst_50 = arith.constant dense<0.000000e+00> : vector<2xf32>
    %176 = vector.multi_reduction <add>, %175, %cst_50 [1] : vector<2x128xf32> to vector<2xf32>
    %177 = vector.shape_cast %176 : vector<2xf32> to vector<2x1xf32>
    %178 = vector.broadcast %12 : f32 to vector<2x1xf32>
    %179 = arith.addf %177, %178 : vector<2x1xf32>
    %180 = vector.broadcast %c3_i32 : i32 to vector<2x8xi32>
    %181 = arith.cmpi eq, %13, %180 : vector<2x8xi32>
    %182 = vector.shape_cast %179 : vector<2x1xf32> to vector<2x1xf32>
    %183 = vector.broadcast %182 : vector<2x1xf32> to vector<2x8xf32>
    %184 = arith.select %181, %183, %142 : vector<2x8xi1>, vector<2x8xf32>
    %c4_i32 = arith.constant 4 : i32
    %185 = arith.index_cast %c4_i32 : i32 to index
    %c0_51 = arith.constant 0 : index
    %c0_52 = arith.constant 0 : index
    %186 = vector.load %arg7[%185, %c0_51, %c0_52] : memref<8x2x512xf32, #tpu.memory_space<vmem>>, vector<1x2x512xf32>
    %187 = vector.shape_cast %186 : vector<1x2x512xf32> to vector<2x512xf32>
    %c0_53 = arith.constant 0 : index
    %c0_54 = arith.constant 0 : index
    %188 = vector.load %arg2[%c0_53, %c0_54] : memref<128x512xf32, #tpu.memory_space<vmem>>, vector<128x512xf32>
    %cst_55 = arith.constant dense<0.000000e+00> : vector<2x512xf32>
    %189 = tpu.matmul %173, %188, %cst_55 {dimension_numbers = #tpu.dot_dimension_numbers<[1], [0], [0], [1], [0, 0, 1, 1], [], []>} : vector<2x128xf32>, vector<128x512xf32>, vector<2x512xf32> -> vector<2x512xf32>
    %190 = arith.addf %187, %189 : vector<2x512xf32>
    %191 = vector.extract_strided_slice %190 {offsets = [0, 0], sizes = [2, 128], strides = [1, 1]} : vector<2x512xf32> to vector<2x128xf32>
    %192 = arith.negf %191 : vector<2x128xf32>
    %193 = math.exp %192 : vector<2x128xf32>
    %cst_56 = arith.constant 1.000000e+00 : f32
    %194 = vector.broadcast %cst_56 : f32 to vector<2x128xf32>
    %195 = arith.addf %194, %193 : vector<2x128xf32>
    %196 = arith.divf %194, %195 : vector<2x128xf32>
    %197 = vector.extract_strided_slice %190 {offsets = [0, 128], sizes = [2, 128], strides = [1, 1]} : vector<2x512xf32> to vector<2x128xf32>
    %198 = arith.negf %197 : vector<2x128xf32>
    %199 = math.exp %198 : vector<2x128xf32>
    %cst_57 = arith.constant 1.000000e+00 : f32
    %200 = vector.broadcast %cst_57 : f32 to vector<2x128xf32>
    %201 = arith.addf %200, %199 : vector<2x128xf32>
    %202 = arith.divf %200, %201 : vector<2x128xf32>
    %203 = vector.extract_strided_slice %190 {offsets = [0, 256], sizes = [2, 128], strides = [1, 1]} : vector<2x512xf32> to vector<2x128xf32>
    %204 = math.tanh %203 : vector<2x128xf32>
    %205 = vector.extract_strided_slice %190 {offsets = [0, 384], sizes = [2, 128], strides = [1, 1]} : vector<2x512xf32> to vector<2x128xf32>
    %206 = arith.negf %205 : vector<2x128xf32>
    %207 = math.exp %206 : vector<2x128xf32>
    %cst_58 = arith.constant 1.000000e+00 : f32
    %208 = vector.broadcast %cst_58 : f32 to vector<2x128xf32>
    %209 = arith.addf %208, %207 : vector<2x128xf32>
    %210 = arith.divf %208, %209 : vector<2x128xf32>
    %211 = arith.mulf %202, %171 : vector<2x128xf32>
    %212 = arith.mulf %196, %204 : vector<2x128xf32>
    %213 = arith.addf %211, %212 : vector<2x128xf32>
    %214 = math.tanh %213 : vector<2x128xf32>
    %215 = arith.mulf %210, %214 : vector<2x128xf32>
    %216 = vector.broadcast %11 : vector<1x128xf32> to vector<2x128xf32>
    %217 = arith.mulf %215, %216 : vector<2x128xf32>
    %cst_59 = arith.constant dense<0.000000e+00> : vector<2xf32>
    %218 = vector.multi_reduction <add>, %217, %cst_59 [1] : vector<2x128xf32> to vector<2xf32>
    %219 = vector.shape_cast %218 : vector<2xf32> to vector<2x1xf32>
    %220 = vector.broadcast %12 : f32 to vector<2x1xf32>
    %221 = arith.addf %219, %220 : vector<2x1xf32>
    %222 = vector.broadcast %c4_i32 : i32 to vector<2x8xi32>
    %223 = arith.cmpi eq, %13, %222 : vector<2x8xi32>
    %224 = vector.shape_cast %221 : vector<2x1xf32> to vector<2x1xf32>
    %225 = vector.broadcast %224 : vector<2x1xf32> to vector<2x8xf32>
    %226 = arith.select %223, %225, %184 : vector<2x8xi1>, vector<2x8xf32>
    %c5_i32 = arith.constant 5 : i32
    %227 = arith.index_cast %c5_i32 : i32 to index
    %c0_60 = arith.constant 0 : index
    %c0_61 = arith.constant 0 : index
    %228 = vector.load %arg7[%227, %c0_60, %c0_61] : memref<8x2x512xf32, #tpu.memory_space<vmem>>, vector<1x2x512xf32>
    %229 = vector.shape_cast %228 : vector<1x2x512xf32> to vector<2x512xf32>
    %c0_62 = arith.constant 0 : index
    %c0_63 = arith.constant 0 : index
    %230 = vector.load %arg2[%c0_62, %c0_63] : memref<128x512xf32, #tpu.memory_space<vmem>>, vector<128x512xf32>
    %cst_64 = arith.constant dense<0.000000e+00> : vector<2x512xf32>
    %231 = tpu.matmul %215, %230, %cst_64 {dimension_numbers = #tpu.dot_dimension_numbers<[1], [0], [0], [1], [0, 0, 1, 1], [], []>} : vector<2x128xf32>, vector<128x512xf32>, vector<2x512xf32> -> vector<2x512xf32>
    %232 = arith.addf %229, %231 : vector<2x512xf32>
    %233 = vector.extract_strided_slice %232 {offsets = [0, 0], sizes = [2, 128], strides = [1, 1]} : vector<2x512xf32> to vector<2x128xf32>
    %234 = arith.negf %233 : vector<2x128xf32>
    %235 = math.exp %234 : vector<2x128xf32>
    %cst_65 = arith.constant 1.000000e+00 : f32
    %236 = vector.broadcast %cst_65 : f32 to vector<2x128xf32>
    %237 = arith.addf %236, %235 : vector<2x128xf32>
    %238 = arith.divf %236, %237 : vector<2x128xf32>
    %239 = vector.extract_strided_slice %232 {offsets = [0, 128], sizes = [2, 128], strides = [1, 1]} : vector<2x512xf32> to vector<2x128xf32>
    %240 = arith.negf %239 : vector<2x128xf32>
    %241 = math.exp %240 : vector<2x128xf32>
    %cst_66 = arith.constant 1.000000e+00 : f32
    %242 = vector.broadcast %cst_66 : f32 to vector<2x128xf32>
    %243 = arith.addf %242, %241 : vector<2x128xf32>
    %244 = arith.divf %242, %243 : vector<2x128xf32>
    %245 = vector.extract_strided_slice %232 {offsets = [0, 256], sizes = [2, 128], strides = [1, 1]} : vector<2x512xf32> to vector<2x128xf32>
    %246 = math.tanh %245 : vector<2x128xf32>
    %247 = vector.extract_strided_slice %232 {offsets = [0, 384], sizes = [2, 128], strides = [1, 1]} : vector<2x512xf32> to vector<2x128xf32>
    %248 = arith.negf %247 : vector<2x128xf32>
    %249 = math.exp %248 : vector<2x128xf32>
    %cst_67 = arith.constant 1.000000e+00 : f32
    %250 = vector.broadcast %cst_67 : f32 to vector<2x128xf32>
    %251 = arith.addf %250, %249 : vector<2x128xf32>
    %252 = arith.divf %250, %251 : vector<2x128xf32>
    %253 = arith.mulf %244, %213 : vector<2x128xf32>
    %254 = arith.mulf %238, %246 : vector<2x128xf32>
    %255 = arith.addf %253, %254 : vector<2x128xf32>
    %256 = math.tanh %255 : vector<2x128xf32>
    %257 = arith.mulf %252, %256 : vector<2x128xf32>
    %258 = vector.broadcast %11 : vector<1x128xf32> to vector<2x128xf32>
    %259 = arith.mulf %257, %258 : vector<2x128xf32>
    %cst_68 = arith.constant dense<0.000000e+00> : vector<2xf32>
    %260 = vector.multi_reduction <add>, %259, %cst_68 [1] : vector<2x128xf32> to vector<2xf32>
    %261 = vector.shape_cast %260 : vector<2xf32> to vector<2x1xf32>
    %262 = vector.broadcast %12 : f32 to vector<2x1xf32>
    %263 = arith.addf %261, %262 : vector<2x1xf32>
    %264 = vector.broadcast %c5_i32 : i32 to vector<2x8xi32>
    %265 = arith.cmpi eq, %13, %264 : vector<2x8xi32>
    %266 = vector.shape_cast %263 : vector<2x1xf32> to vector<2x1xf32>
    %267 = vector.broadcast %266 : vector<2x1xf32> to vector<2x8xf32>
    %268 = arith.select %265, %267, %226 : vector<2x8xi1>, vector<2x8xf32>
    %c6_i32 = arith.constant 6 : i32
    %269 = arith.index_cast %c6_i32 : i32 to index
    %c0_69 = arith.constant 0 : index
    %c0_70 = arith.constant 0 : index
    %270 = vector.load %arg7[%269, %c0_69, %c0_70] : memref<8x2x512xf32, #tpu.memory_space<vmem>>, vector<1x2x512xf32>
    %271 = vector.shape_cast %270 : vector<1x2x512xf32> to vector<2x512xf32>
    %c0_71 = arith.constant 0 : index
    %c0_72 = arith.constant 0 : index
    %272 = vector.load %arg2[%c0_71, %c0_72] : memref<128x512xf32, #tpu.memory_space<vmem>>, vector<128x512xf32>
    %cst_73 = arith.constant dense<0.000000e+00> : vector<2x512xf32>
    %273 = tpu.matmul %257, %272, %cst_73 {dimension_numbers = #tpu.dot_dimension_numbers<[1], [0], [0], [1], [0, 0, 1, 1], [], []>} : vector<2x128xf32>, vector<128x512xf32>, vector<2x512xf32> -> vector<2x512xf32>
    %274 = arith.addf %271, %273 : vector<2x512xf32>
    %275 = vector.extract_strided_slice %274 {offsets = [0, 0], sizes = [2, 128], strides = [1, 1]} : vector<2x512xf32> to vector<2x128xf32>
    %276 = arith.negf %275 : vector<2x128xf32>
    %277 = math.exp %276 : vector<2x128xf32>
    %cst_74 = arith.constant 1.000000e+00 : f32
    %278 = vector.broadcast %cst_74 : f32 to vector<2x128xf32>
    %279 = arith.addf %278, %277 : vector<2x128xf32>
    %280 = arith.divf %278, %279 : vector<2x128xf32>
    %281 = vector.extract_strided_slice %274 {offsets = [0, 128], sizes = [2, 128], strides = [1, 1]} : vector<2x512xf32> to vector<2x128xf32>
    %282 = arith.negf %281 : vector<2x128xf32>
    %283 = math.exp %282 : vector<2x128xf32>
    %cst_75 = arith.constant 1.000000e+00 : f32
    %284 = vector.broadcast %cst_75 : f32 to vector<2x128xf32>
    %285 = arith.addf %284, %283 : vector<2x128xf32>
    %286 = arith.divf %284, %285 : vector<2x128xf32>
    %287 = vector.extract_strided_slice %274 {offsets = [0, 256], sizes = [2, 128], strides = [1, 1]} : vector<2x512xf32> to vector<2x128xf32>
    %288 = math.tanh %287 : vector<2x128xf32>
    %289 = vector.extract_strided_slice %274 {offsets = [0, 384], sizes = [2, 128], strides = [1, 1]} : vector<2x512xf32> to vector<2x128xf32>
    %290 = arith.negf %289 : vector<2x128xf32>
    %291 = math.exp %290 : vector<2x128xf32>
    %cst_76 = arith.constant 1.000000e+00 : f32
    %292 = vector.broadcast %cst_76 : f32 to vector<2x128xf32>
    %293 = arith.addf %292, %291 : vector<2x128xf32>
    %294 = arith.divf %292, %293 : vector<2x128xf32>
    %295 = arith.mulf %286, %255 : vector<2x128xf32>
    %296 = arith.mulf %280, %288 : vector<2x128xf32>
    %297 = arith.addf %295, %296 : vector<2x128xf32>
    %298 = math.tanh %297 : vector<2x128xf32>
    %299 = arith.mulf %294, %298 : vector<2x128xf32>
    %300 = vector.broadcast %11 : vector<1x128xf32> to vector<2x128xf32>
    %301 = arith.mulf %299, %300 : vector<2x128xf32>
    %cst_77 = arith.constant dense<0.000000e+00> : vector<2xf32>
    %302 = vector.multi_reduction <add>, %301, %cst_77 [1] : vector<2x128xf32> to vector<2xf32>
    %303 = vector.shape_cast %302 : vector<2xf32> to vector<2x1xf32>
    %304 = vector.broadcast %12 : f32 to vector<2x1xf32>
    %305 = arith.addf %303, %304 : vector<2x1xf32>
    %306 = vector.broadcast %c6_i32 : i32 to vector<2x8xi32>
    %307 = arith.cmpi eq, %13, %306 : vector<2x8xi32>
    %308 = vector.shape_cast %305 : vector<2x1xf32> to vector<2x1xf32>
    %309 = vector.broadcast %308 : vector<2x1xf32> to vector<2x8xf32>
    %310 = arith.select %307, %309, %268 : vector<2x8xi1>, vector<2x8xf32>
    %c7_i32 = arith.constant 7 : i32
    %311 = arith.index_cast %c7_i32 : i32 to index
    %c0_78 = arith.constant 0 : index
    %c0_79 = arith.constant 0 : index
    %312 = vector.load %arg7[%311, %c0_78, %c0_79] : memref<8x2x512xf32, #tpu.memory_space<vmem>>, vector<1x2x512xf32>
    %313 = vector.shape_cast %312 : vector<1x2x512xf32> to vector<2x512xf32>
    %c0_80 = arith.constant 0 : index
    %c0_81 = arith.constant 0 : index
    %314 = vector.load %arg2[%c0_80, %c0_81] : memref<128x512xf32, #tpu.memory_space<vmem>>, vector<128x512xf32>
    %cst_82 = arith.constant dense<0.000000e+00> : vector<2x512xf32>
    %315 = tpu.matmul %299, %314, %cst_82 {dimension_numbers = #tpu.dot_dimension_numbers<[1], [0], [0], [1], [0, 0, 1, 1], [], []>} : vector<2x128xf32>, vector<128x512xf32>, vector<2x512xf32> -> vector<2x512xf32>
    %316 = arith.addf %313, %315 : vector<2x512xf32>
    %317 = vector.extract_strided_slice %316 {offsets = [0, 0], sizes = [2, 128], strides = [1, 1]} : vector<2x512xf32> to vector<2x128xf32>
    %318 = arith.negf %317 : vector<2x128xf32>
    %319 = math.exp %318 : vector<2x128xf32>
    %cst_83 = arith.constant 1.000000e+00 : f32
    %320 = vector.broadcast %cst_83 : f32 to vector<2x128xf32>
    %321 = arith.addf %320, %319 : vector<2x128xf32>
    %322 = arith.divf %320, %321 : vector<2x128xf32>
    %323 = vector.extract_strided_slice %316 {offsets = [0, 128], sizes = [2, 128], strides = [1, 1]} : vector<2x512xf32> to vector<2x128xf32>
    %324 = arith.negf %323 : vector<2x128xf32>
    %325 = math.exp %324 : vector<2x128xf32>
    %cst_84 = arith.constant 1.000000e+00 : f32
    %326 = vector.broadcast %cst_84 : f32 to vector<2x128xf32>
    %327 = arith.addf %326, %325 : vector<2x128xf32>
    %328 = arith.divf %326, %327 : vector<2x128xf32>
    %329 = vector.extract_strided_slice %316 {offsets = [0, 256], sizes = [2, 128], strides = [1, 1]} : vector<2x512xf32> to vector<2x128xf32>
    %330 = math.tanh %329 : vector<2x128xf32>
    %331 = vector.extract_strided_slice %316 {offsets = [0, 384], sizes = [2, 128], strides = [1, 1]} : vector<2x512xf32> to vector<2x128xf32>
    %332 = arith.negf %331 : vector<2x128xf32>
    %333 = math.exp %332 : vector<2x128xf32>
    %cst_85 = arith.constant 1.000000e+00 : f32
    %334 = vector.broadcast %cst_85 : f32 to vector<2x128xf32>
    %335 = arith.addf %334, %333 : vector<2x128xf32>
    %336 = arith.divf %334, %335 : vector<2x128xf32>
    %337 = arith.mulf %328, %297 : vector<2x128xf32>
    %338 = arith.mulf %322, %330 : vector<2x128xf32>
    %339 = arith.addf %337, %338 : vector<2x128xf32>
    %340 = math.tanh %339 : vector<2x128xf32>
    %341 = arith.mulf %336, %340 : vector<2x128xf32>
    %342 = vector.broadcast %11 : vector<1x128xf32> to vector<2x128xf32>
    %343 = arith.mulf %341, %342 : vector<2x128xf32>
    %cst_86 = arith.constant dense<0.000000e+00> : vector<2xf32>
    %344 = vector.multi_reduction <add>, %343, %cst_86 [1] : vector<2x128xf32> to vector<2xf32>
    %345 = vector.shape_cast %344 : vector<2xf32> to vector<2x1xf32>
    %346 = vector.broadcast %12 : f32 to vector<2x1xf32>
    %347 = arith.addf %345, %346 : vector<2x1xf32>
    %348 = vector.broadcast %c7_i32 : i32 to vector<2x8xi32>
    %349 = arith.cmpi eq, %13, %348 : vector<2x8xi32>
    %350 = vector.shape_cast %347 : vector<2x1xf32> to vector<2x1xf32>
    %351 = vector.broadcast %350 : vector<2x1xf32> to vector<2x8xf32>
    %352 = arith.select %349, %351, %310 : vector<2x8xi1>, vector<2x8xf32>
    %c8_i32 = arith.constant 8 : i32
    %c0_87 = arith.constant 0 : index
    %c0_88 = arith.constant 0 : index
    %353 = vector.load %arg6[%c0_87, %c0_88] : memref<2x8xf32, #tpu.memory_space<vmem>>, vector<2x8xf32>
    tpu.vector_store %arg6[%c0_87, %c0_88], %352 {strides = array<i32>} : memref<2x8xf32, #tpu.memory_space<vmem>>, vector<2x8xf32>,
    return
  }
}

</mosaic_0001>

<bundles_post_ra>
// kernel: tpu_custom_call.1
= control target key start
LH: loop header
LB: loop body
LE: loop exit
PB: predicated region body
PF: predicated region fallthrough
CT: control target
= control target key end

     0   :  { %12 = vsyncpa [#allocation5], 0  ;;  %s3433_s0 = inlined_call_operand.vmem [shape: f32[8,2,1], index: 0, kind: input, shape index: {}]   ;;  %s3434_s1 = inlined_call_operand.vmem [shape: f32[1,512], index: 1, kind: input, shape index: {}]   ;;  %s3435_s2 = inlined_call_operand.hbm [shape: f32[128,512], index: 2, kind: input, shape index: {}]   ;;  %s3436_s3 = inlined_call_operand.vmem [shape: f32[1,512], index: 3, kind: input, shape index: {}]   ;;  %s3437_s4 = inlined_call_operand.vmem [shape: f32[1,128], index: 4, kind: input, shape index: {}]   ;;  %s3438_s5 = inlined_call_operand.<no memory space> [shape: f32[1,1], index: 5, kind: input, shape index: {}]   ;;  %s3439_s6 = inlined_call_operand.hbm [shape: f32[2,8], index: 6, kind: output, shape index: {}]  }
   0x1   :  { %13 = vsyncpa [#allocation6], 0  ;;  %s2834_s21 = smov [#allocation4]   ;;  %s2786_s25 = scalar_lea.hbm %s3435_s2, 8192 }
   0x2   :  { %s23_s22 = sshll.u32 %s2834_s21, 4  ;;  %p2787_p0 = scmp.ne.s32.totalorder %s3435_s2, %s2786_s25  ;;  %s24_s22 = int_to_ptr.vmem [resolvable:$true] %s23_s22 }
   0x3   :  { %p2790_p1 = scmp.lt.u32.totalorder %s2786_s25, %s3435_s2 }
   0x5   :  { %p2792_p2 = pnand %p2790_p1, %p2787_p0 }
   0x7   :  { %2795 = shalt.err (!%p2792_p2)
}
   0x8   :  { %s2796_s30 = scalar_lea.vmem %s24_s22, 8192  ;;  %p2801_p4 = scmp.lt.s32.totalorder %s24_s22, %s24_s22 }
   0x9   :  { %p2797_p3 = scmp.ne.s32.totalorder %s24_s22, %s2796_s30  ;;  %p2802_p5 = scmp.lt.s32.totalorder %s2796_s30, %s2796_s30 }
   0xb   :  { %p2803_p6 = por %p2802_p5, %p2801_p4 }
   0xd   :  { %p2804_p7 = pnand %p2803_p6, %p2797_p3 }
   0xf   :  { %2807 = shalt.err (!%p2804_p7)
}
  0x10   :  { %s2835_s7 = smov 512   ;;  %s2836_s8 = smov 32  }
  0x11   :  { %29 = dma.hbm_to_vmem [thread:$0]  %s3435_s2, 8192, %s24_s22, [#allocation5], %s2835_s7, %s2835_s7, %s2836_s8  }
  0x12   :  { %2830 = dma.done.wait [#allocation5], 8192  }
  0x13   :  { %2831 = vsyncadd [#allocation5], 4294959104  ;;  %v3441_v0 = vmov 0.0   ;;  %v2838_v1 = vmov 0   ;;  %v385_v2 = vld [vmem:[#allocation4 + $0x8] sm:$0xff]  ;;  %v387_v4 = vld [vmem:[#allocation4 + $0x18] sm:$0xff] }
  0x14   :  { %512 = vmatprep.mubr.f32.mxu0 %v3441_v0  ;;  %583 = vmatprep.mubr.f32.mxu1 %v3441_v0  ;;  %v389_v3 = vld [vmem:[#allocation4 + $0x28] sm:$0xff]  ;;  %v391_v6 = vld [vmem:[#allocation4 + $0x38] sm:$0xff]  ;;  %v384_v7 = vld [vmem:[#allocation4] sm:$0xff]  ;;  %vm651_vm0 = vcmask 1041408   ;;  %vm2094_vm9 = vcmask 58368  }
  0x15   :  { %2655 = vset.pattern.permute.xlu0 %v2838_v1  ;;  %2656 = vset.pattern.permute.xlu1 %v2838_v1  ;;  %v2890_v5 = vpack.c.bf16 %v389_v3, %v385_v2  ;;  %v388_v8 = vld [vmem:[#allocation4 + $0x20] sm:$0xff]  ;;  %v2892_v9 = vpack.c.bf16 %v391_v6, %v387_v4  ;;  %v386_v11 = vld [vmem:[#allocation4 + $0x10] sm:$0xff]  ;;  %v393_v13 = vld [vmem:[#allocation4 + $0x48] sm:$0xff] }
  0x16   :  { %v2894_v10 = vpack.c.bf16 %v388_v8, %v384_v7  ;;  %v390_v12 = vld [vmem:[#allocation4 + $0x30] sm:$0xff]  ;;  %v397_v15 = vld [vmem:[#allocation4 + $0x68] sm:$0xff]  ;;  %v395_v16 = vld [vmem:[#allocation4 + $0x58] sm:$0xff] }
  0x17   :  { %2137 = vmatprep.subr.bf16.mxu0 %v2890_v5  ;;  %v2897_v14 = vpack.c.bf16 %v390_v12, %v386_v11  ;;  %v399_v17 = vld [vmem:[#allocation4 + $0x78] sm:$0xff]  ;;  %2169 = vmatprep.subr.bf16.mxu1 %v2892_v9  ;;  %v2901_v18 = vpack.c.bf16 %v397_v15, %v393_v13  ;;  %v392_v20 = vld [vmem:[#allocation4 + $0x40] sm:$0xff]  ;;  %v394_v22 = vld [vmem:[#allocation4 + $0x50] sm:$0xff] }
  0x18   :  { %2139 = vmatpush1.bf16.msra.mxu0 %v2894_v10  ;;  %v2903_v19 = vpack.c.bf16 %v399_v17, %v395_v16  ;;  %v396_v21 = vld [vmem:[#allocation4 + $0x60] sm:$0xff]  ;;  %v398_v24 = vld [vmem:[#allocation4 + $0x70] sm:$0xff]  ;;  %v401_v25 = vld [vmem:[#allocation4 + $0x88] sm:$0xff] }
  0x19   :  { %2171 = vmatpush1.bf16.msra.mxu1 %v2897_v14  ;;  %v2906_v23 = vpack.c.bf16 %v396_v21, %v392_v20  ;;  %v405_v26 = vld [vmem:[#allocation4 + $0xa8] sm:$0xff]  ;;  %2141 = vmatprep.subr.bf16.mxu0 %v2901_v18  ;;  %v2910_v27 = vpack.c.bf16 %v398_v24, %v394_v22  ;;  %v403_v29 = vld [vmem:[#allocation4 + $0x98] sm:$0xff]  ;;  %v400_v31 = vld [vmem:[#allocation4 + $0x80] sm:$0xff] }
  0x1a   :  { %2173 = vmatprep.subr.bf16.mxu1 %v2903_v19  ;;  %v2912_v28 = vpack.c.bf16 %v405_v26, %v401_v25  ;;  %v407_v30 = vld [vmem:[#allocation4 + $0xb8] sm:$0xff]  ;;  %v404_v33 = vld [vmem:[#allocation4 + $0xa0] sm:$0xff]  ;;  %v402_v34 = vld [vmem:[#allocation4 + $0x90] sm:$0xff] }
  0x1b   :  { %v2914_v32 = vpack.c.bf16 %v407_v30, %v403_v29  ;;  %v406_v35 = vld [vmem:[#allocation4 + $0xb0] sm:$0xff]  ;;  %v2917_v36 = vpack.c.bf16 %v404_v33, %v400_v31  ;;  %v409_v37 = vld [vmem:[#allocation4 + $0xc8] sm:$0xff]  ;;  %v411_v39 = vld [vmem:[#allocation4 + $0xd8] sm:$0xff] }
  0x1c   :  { %2143 = vmatpush1.bf16.msra.mxu0 %v2906_v23  ;;  %v413_v38 = vld [vmem:[#allocation4 + $0xe8] sm:$0xff]  ;;  %v2921_v40 = vpack.c.bf16 %v406_v35, %v402_v34  ;;  %v415_v42 = vld [vmem:[#allocation4 + $0xf8] sm:$0xff]  ;;  %v408_v43 = vld [vmem:[#allocation4 + $0xc0] sm:$0xff] }
  0x1d   :  { %2175 = vmatpush1.bf16.msra.mxu1 %v2910_v27  ;;  %2145 = vmatprep.subr.bf16.mxu0 %v2912_v28  ;;  %v2923_v41 = vpack.c.bf16 %v413_v38, %v409_v37  ;;  %v412_v44 = vld [vmem:[#allocation4 + $0xe0] sm:$0xff]  ;;  %v2926_v45 = vpack.c.bf16 %v415_v42, %v411_v39  ;;  %v410_v46 = vld [vmem:[#allocation4 + $0xd0] sm:$0xff]  ;;  %v417_v48 = vld [vmem:[#allocation4 + $0x108] sm:$0xff] }
  0x1e   :  { %2177 = vmatprep.subr.bf16.mxu1 %v2914_v32  ;;  %v414_v47 = vld [vmem:[#allocation4 + $0xf0] sm:$0xff]  ;;  %v421_v49 = vld [vmem:[#allocation4 + $0x128] sm:$0xff]  ;;  %v419_v50 = vld [vmem:[#allocation4 + $0x118] sm:$0xff]  ;;  %v2929_v52 = vpack.c.bf16 %v412_v44, %v408_v43 }
  0x1f   :  { %v423_v51 = vld [vmem:[#allocation4 + $0x138] sm:$0xff]  ;;  %v2933_v53 = vpack.c.bf16 %v414_v47, %v410_v46  ;;  %v2935_v54 = vpack.c.bf16 %v421_v49, %v417_v48  ;;  %v416_v55 = vld [vmem:[#allocation4 + $0x100] sm:$0xff]  ;;  %v418_v57 = vld [vmem:[#allocation4 + $0x110] sm:$0xff] }
  0x20   :  { %2147 = vmatpush1.bf16.msra.mxu0 %v2917_v36  ;;  %v420_v56 = vld [vmem:[#allocation4 + $0x120] sm:$0xff]  ;;  %v2938_v58 = vpack.c.bf16 %v423_v51, %v419_v50  ;;  %v422_v59 = vld [vmem:[#allocation4 + $0x130] sm:$0xff]  ;;  %v425_v60 = vld [vmem:[#allocation4 + $0x148] sm:$0xff] }
  0x21   :  { %2179 = vmatpush1.bf16.msra.mxu1 %v2921_v40  ;;  %2149 = vmatprep.subr.bf16.mxu0 %v2923_v41  ;;  %v429_v61 = vld [vmem:[#allocation4 + $0x168] sm:$0xff]  ;;  %v427_v62 = vld [vmem:[#allocation4 + $0x158] sm:$0xff]  ;;  %v2941_v1 = vpack.c.bf16 %v420_v56, %v416_v55  ;;  %v2945_v2 = vpack.c.bf16 %v422_v59, %v418_v57  ;;  %v424_v4 = vld [vmem:[#allocation4 + $0x140] sm:$0xff]  ;;  %v3440_v56 = vlaneseq }
  0x22   :  { %2181 = vmatprep.subr.bf16.mxu1 %v2926_v45  ;;  %v431_v63 = vld [vmem:[#allocation4 + $0x178] sm:$0xff]  ;;  %v2947_v3 = vpack.c.bf16 %v429_v61, %v425_v60  ;;  %v428_v6 = vld [vmem:[#allocation4 + $0x160] sm:$0xff]  ;;  %v426_v7 = vld [vmem:[#allocation4 + $0x150] sm:$0xff] }
  0x23   :  { %v2950_v8 = vpack.c.bf16 %v431_v63, %v427_v62  ;;  %v430_v11 = vld [vmem:[#allocation4 + $0x170] sm:$0xff]  ;;  %v433_v12 = vld [vmem:[#allocation4 + $0x188] sm:$0xff]  ;;  %v435_v15 = vld [vmem:[#allocation4 + $0x198] sm:$0xff]  ;;  %v2953_v17 = vpack.c.bf16 %v428_v6, %v424_v4  ;;  %v90_v57 = vshrl.u32 %v3440_v56, 7 }
  0x24   :  { %2151 = vmatpush1.bf16.msra.mxu0 %v2929_v52  ;;  %v437_v13 = vld [vmem:[#allocation4 + $0x1a8] sm:$0xff]  ;;  %v439_v16 = vld [vmem:[#allocation4 + $0x1b8] sm:$0xff]  ;;  %v432_v20 = vld [vmem:[#allocation4 + $0x180] sm:$0xff]  ;;  %v2957_v21 = vpack.c.bf16 %v430_v11, %v426_v7 }
  0x25   :  { %2183 = vmatpush1.bf16.msra.mxu1 %v2933_v53  ;;  %2153 = vmatprep.subr.bf16.mxu0 %v2935_v54  ;;  %v2959_v22 = vpack.c.bf16 %v437_v13, %v433_v12  ;;  %v436_v24 = vld [vmem:[#allocation4 + $0x1a0] sm:$0xff]  ;;  %v434_v25 = vld [vmem:[#allocation4 + $0x190] sm:$0xff]  ;;  %v2965_v29 = vpack.c.bf16 %v439_v16, %v435_v15  ;;  %v441_v31 = vld [vmem:[#allocation4 + $0x1c8] sm:$0xff]  ;;  %v91_v59 = vsub.s32 0, %v90_v57  ;;  %v95_v60 = vsub.s32 1, %v90_v57 }
  0x26   :  { %2185 = vmatprep.subr.bf16.mxu1 %v2938_v58  ;;  %v39_v26 = vld [vmem:[%s3433_s0] sm:$0x3]  ;;  %v438_v30 = vld [vmem:[#allocation4 + $0x1b0] sm:$0xff]  ;;  %v445_v33 = vld [vmem:[#allocation4 + $0x1e8] sm:$0xff]  ;;  %v2971_v38 = vpack.c.bf16 %v436_v24, %v432_v20  ;;  %v99_v61 = vsub.s32 2, %v90_v57  ;;  %v103_v62 = vsub.s32 3, %v90_v57 }
  0x27   :  { %50 = vperm.xlu0 %2655, %v39_v26   ;;  %v443_v34 = vld [vmem:[#allocation4 + $0x1d8] sm:$0xff]  ;;  %v40_v37 = vld [vmem:[%s3433_s0 + $0x2] sm:$0x3]  ;;  %v2975_v39 = vpack.c.bf16 %v438_v30, %v434_v25  ;;  %v2977_v42 = vpack.c.bf16 %v445_v33, %v441_v31  ;;  %v442_v47 = vld [vmem:[#allocation4 + $0x1d0] sm:$0xff]  ;;  %v2839_v13 = vmov 1983009808  }
  0x28   :  { %2155 = vmatpush1.bf16.msra.mxu0 %v2941_v1  ;;  %v447_v35 = vld [vmem:[#allocation4 + $0x1f8] sm:$0xff]  ;;  %v440_v43 = vld [vmem:[#allocation4 + $0x1c0] sm:$0xff]  ;;  %v446_v48 = vld [vmem:[#allocation4 + $0x1f0] sm:$0xff]  ;;  %v230_v15 = vunpack.c.l.s4 %v2839_v13 }
  0x29   :  { %2187 = vmatpush1.bf16.msra.mxu1 %v2945_v2  ;;  %2157 = vmatprep.subr.bf16.mxu0 %v2947_v3  ;;  %v444_v44 = vld [vmem:[#allocation4 + $0x1e0] sm:$0xff]  ;;  %v2980_v46 = vpack.c.bf16 %v447_v35, %v443_v34  ;;  %v43_v49 = vld [vmem:[%s3433_s0 + $0x8] sm:$0x3]  ;;  %v2990_v51 = vpack.c.bf16 %v446_v48, %v442_v47  ;;  %v45_v55 = vld [vmem:[%s3433_s0 + $0xc] sm:$0x3] }
  0x2a   :  { %2189 = vmatprep.subr.bf16.mxu1 %v2950_v8  ;;  %v2986_v50 = vpack.c.bf16 %v444_v44, %v440_v43  ;;  %v47_v63 = vld [vmem:[%s3434_s1] sm:$0xf]  ;;  %v231_v35 = vunpack.c.0.s8 %v230_v15 }
  0x2b   :  { %55 = vperm.xlu0 %2655, %v40_v37   ;;  %v3040_v4 = vrot.slane %v47_v63, %v91_v59  ;;  %v3042_v6 = vrot.slane %v47_v63, %v95_v60  ;;  %v3044_v7 = vrot.slane %v47_v63, %v99_v61  ;;  %v3046_v11 = vrot.slane %v47_v63, %v103_v62  ;;  %v141_v12 = vld [vmem:[%s3436_s3] sm:$0xf] }
  0x2c   :  { %2159 = vmatpush1.bf16.msra.mxu0 %v2953_v17  ;;  %v3051_v16 = vrot.slane %v141_v12, %v91_v59  ;;  %v3053_v20 = vrot.slane %v141_v12, %v95_v60  ;;  %v3055_v24 = vrot.slane %v141_v12, %v99_v61  ;;  %v3057_v25 = vrot.slane %v141_v12, %v103_v62 }
  0x2d   :  { %2191 = vmatpush1.bf16.msra.mxu1 %v2957_v21  ;;  %2161 = vmatprep.subr.bf16.mxu0 %v2959_v22  ;;  %v3067_v48 = vsub.s32 %v231_v35, %v90_v57 }
  0x2e   :  { %2193 = vmatprep.subr.bf16.mxu1 %v2965_v29  ;;  %3447 = vst [vmem:[#allocation10_spill] sm:$0xff] %v3055_v24  ;;  %3448 = vst [vmem:[#allocation11_spill] sm:$0xff] %v3057_v25 }
  0x2f   :  { %70 = vperm.xlu0 %2655, %v43_v49  }
  0x30   :  { %2163 = vmatpush1.bf16.msra.mxu0 %v2971_v38 }
  0x31   :  { %2195 = vmatpush1.bf16.msra.mxu1 %v2975_v39  ;;  %2165 = vmatprep.subr.bf16.mxu0 %v2977_v42 }
  0x32   :  { %2197 = vmatprep.subr.bf16.mxu1 %v2980_v46 }
  0x33   :  { %80 = vperm.xlu0 %2655, %v45_v55  }
  0x34   :  { %2167 = vmatpush1.bf16.msra.mxu0 %v2986_v50 }
  0x35   :  { %2199 = vmatpush1.bf16.msra.mxu1 %v2990_v51  ;;  %2201 = vmatprep.subr.bf16.mxu0 %v2890_v5 }
  0x36   :  { %2233 = vmatprep.subr.bf16.mxu1 %v2892_v9 }
  0x37   :  { %513 = vmatmul.mubr.f32.vlgmr.msra.gmra.mrb[0].mxu0 %v3441_v0 }
  0x38   :  { %584 = vmatmul.mubr.f32.vlgmr.msra.gmra.mrb[0].mxu1 %v3441_v0  ;;  %2203 = vmatpush1.bf16.msra.mxu0 %v2894_v10 }
  0x39   :  { %2235 = vmatpush1.bf16.msra.mxu1 %v2897_v14  ;;  %2205 = vmatprep.subr.bf16.mxu0 %v2901_v18 }
  0x3a   :  { %2237 = vmatprep.subr.bf16.mxu1 %v2903_v19  ;;  %725 = vmatprep.mubr.f32.mxu0 %v3441_v0 }
  0x3b   :  { %796 = vmatprep.mubr.f32.mxu1 %v3441_v0 }
  0x3c   :  { %2207 = vmatpush1.bf16.msra.mxu0 %v2906_v23 }
  0x3d   :  { %2239 = vmatpush1.bf16.msra.mxu1 %v2910_v27  ;;  %2209 = vmatprep.subr.bf16.mxu0 %v2912_v28 }
  0x3e   :  { %2241 = vmatprep.subr.bf16.mxu1 %v2914_v32 }
  0x40   :  { %2211 = vmatpush1.bf16.msra.mxu0 %v2917_v36 }
  0x41   :  { %2243 = vmatpush1.bf16.msra.mxu1 %v2921_v40  ;;  %2213 = vmatprep.subr.bf16.mxu0 %v2923_v41 }
  0x42   :  { %2245 = vmatprep.subr.bf16.mxu1 %v2926_v45 }
  0x44   :  { %2215 = vmatpush1.bf16.msra.mxu0 %v2929_v52 }
  0x45   :  { %2247 = vmatpush1.bf16.msra.mxu1 %v2933_v53  ;;  %2217 = vmatprep.subr.bf16.mxu0 %v2935_v54 }
  0x46   :  { %2249 = vmatprep.subr.bf16.mxu1 %v2938_v58 }
  0x48   :  { %2219 = vmatpush1.bf16.msra.mxu0 %v2941_v1 }
  0x49   :  { %2251 = vmatpush1.bf16.msra.mxu1 %v2945_v2  ;;  %2221 = vmatprep.subr.bf16.mxu0 %v2947_v3 }
  0x4a   :  { %2253 = vmatprep.subr.bf16.mxu1 %v2950_v8 }
  0x4c   :  { %2223 = vmatpush1.bf16.msra.mxu0 %v2953_v17 }
  0x4d   :  { %2255 = vmatpush1.bf16.msra.mxu1 %v2957_v21  ;;  %2225 = vmatprep.subr.bf16.mxu0 %v2959_v22 }
  0x4e   :  { %2257 = vmatprep.subr.bf16.mxu1 %v2965_v29 }
  0x50   :  { %2227 = vmatpush1.bf16.msra.mxu0 %v2971_v38 }
  0x51   :  { %2259 = vmatpush1.bf16.msra.mxu1 %v2975_v39  ;;  %2229 = vmatprep.subr.bf16.mxu0 %v2977_v42 }
  0x52   :  { %2261 = vmatprep.subr.bf16.mxu1 %v2980_v46 }
  0x54   :  { %2231 = vmatpush1.bf16.msra.mxu0 %v2986_v50 }
  0x55   :  { %2263 = vmatpush1.bf16.msra.mxu1 %v2990_v51  ;;  %2265 = vmatprep.subr.bf16.mxu0 %v2890_v5 }
  0x56   :  { %2297 = vmatprep.subr.bf16.mxu1 %v2892_v9 }
  0xa6   :  { %v51_v26 = vpop.permute.xlu0 %50 }
  0xa7   :  { %v109_v30 = vmul.f32 %v3040_v4, %v51_v26  ;;  %v110_v31 = vmul.f32 %v3042_v6, %v51_v26  ;;  %v111_v33 = vmul.f32 %v3044_v7, %v51_v26  ;;  %v112_v34 = vmul.f32 %v3046_v11, %v51_v26 }
  0xa9   :  { %v163_v37 = vadd.f32 %v3051_v16, %v109_v30  ;;  %v164_v43 = vadd.f32 %v3053_v20, %v110_v31  ;;  %v165_v44 = vadd.f32 %v3055_v24, %v111_v33  ;;  %v166_v47 = vadd.f32 %v3057_v25, %v112_v34 }
  0xab   :  { %v227_v49 = vcombine.low %v163_v37, %v164_v43  ;;  %v228_v55 = vcombine.low %v165_v44, %v166_v47 }
  0xad   :  { %v235_v62 = vrot.slane %v227_v49, %v3067_v48  ;;  %v242_v63 = vrot.slane %v228_v55, %v3067_v48 }
  0xaf   :  { %v243_v30 = vcombine.low %v235_v62, %v242_v63 }
 0x10a   :  { %v514_v59 = vpop.f32.mrb[0].mxu0 }
 0x10b   :  { %v585_v60 = vpop.f32.mrb[0].mxu1  ;;  %v516_v61 = vpop.f32.mrb[1].mxu0 }
 0x10c   :  { %v594_v12 = vcombine.low %v514_v59, %v516_v61  ;;  %v587_v13 = vpop.f32.mrb[1].mxu1 }
 0x10d   :  { %v595_v15 = vcombine.low %v585_v60, %v587_v13 }
 0x10e   :  { %v602_v26 = vrot.slane %v594_v12, %v3067_v48 }
 0x10f   :  { %v609_v31 = vrot.slane %v595_v15, %v3067_v48 }
 0x111   :  { %v610_v33 = vcombine.low %v602_v26, %v609_v31 }
 0x113   :  { %v612_v57 = vadd.f32 %v610_v33, %v243_v30 }
 0x115   :  { %v2111_v34 = vmul.f32 -1.442695, %v612_v57  ;;  %v620_v35 = vrot.slane %v612_v57, 2  ;;  %v631_v43 = vrot.slane %v612_v57, 6  ;;  %v628_v49 = vrot.slane %v612_v57, 4 }
 0x116   :  { %v3079_v57 = vld [vmem:[%s3437_s4] ss:$0 sm:$0xff] }
 0x117   :  { %2657 = vpow2.f32 %v2111_v34  ;;  %v2112_v37 = vmul.f32 -1.442695, %v620_v35  ;;  %v2113_v44 = vmul.f32 -1.442695, %v631_v43  ;;  %v41_v43 = vld [vmem:[%s3433_s0 + $0x4] sm:$0x3] }
 0x118   :  { %60 = vperm.xlu1 %2656, %v41_v43  }
 0x119   :  { %2659 = vpow2.f32 %v2112_v37 }
 0x11a   :  { %2661 = vpow2.f32 %v2113_v44  ;;  %v42_v44 = vld [vmem:[%s3433_s0 + $0x6] sm:$0x3] }
 0x11c   :  { %65 = vperm.xlu1 %2656, %v42_v44  }
 0x121   :  { %v2658_v47 = vpop.eup %2657 }
 0x122   :  { %v616_v55 = vadd.f32 1.0, %v2658_v47  ;;  %v44_v47 = vld [vmem:[%s3433_s0 + $0xa] sm:$0x3] }
 0x123   :  { %v2660_v59 = vpop.eup %2659  ;;  %75 = vperm.xlu1 %2656, %v44_v47  }
 0x124   :  { %2663 = vrcp.f32 %v616_v55  ;;  %v625_v60 = vadd.f32 1.0, %v2660_v59  ;;  %v2662_v61 = vpop.eup %2661  ;;  %v56_v55 = vpop.permute.xlu0 %55 }
 0x125   :  { %2665 = vtanh.f32 %v628_v49  ;;  %v636_v13 = vadd.f32 1.0, %v2662_v61  ;;  %v46_v49 = vld [vmem:[%s3433_s0 + $0xe] sm:$0x3]  ;;  %v113_v59 = vmul.f32 %v3040_v4, %v56_v55  ;;  %v115_v61 = vmul.f32 %v3044_v7, %v56_v55 }
 0x126   :  { %2667 = vrcp.f32 %v625_v60  ;;  %v114_v60 = vmul.f32 %v3042_v6, %v56_v55 }
 0x127   :  { %2669 = vrcp.f32 %v636_v13  ;;  %85 = vperm.xlu1 %2656, %v46_v49   ;;  %v169_v13 = vadd.f32 %v3055_v24, %v115_v61 }
 0x12e   :  { %v2664_v62 = vpop.eup %2663 }
 0x12f   :  { %v2666_v63 = vpop.eup %2665 }
 0x130   :  { %v2668_v12 = vpop.eup %2667  ;;  %v640_v26 = vmul.f32 %v2666_v63, %v2664_v62  ;;  %v116_v62 = vmul.f32 %v3046_v11, %v56_v55  ;;  %v167_v63 = vadd.f32 %v3051_v16, %v113_v59 }
 0x131   :  { %v639_v15 = vmul.f32 0.0, %v2668_v12  ;;  %v2670_v31 = vpop.eup %2669  ;;  %v168_v12 = vadd.f32 %v3053_v20, %v114_v60 }
 0x133   :  { %v3073_v30 = vadd.f32 %v640_v26, %v639_v15  ;;  %v170_v15 = vadd.f32 %v3057_v25, %v116_v62  ;;  %v244_v26 = vcombine.low %v167_v63, %v168_v12 }
 0x135   :  { %2671 = vtanh.f32 %v3073_v30  ;;  %v252_v44 = vrot.slane %v244_v26, %v3067_v48 }
 0x13f   :  { %v2672_v33 = vpop.eup %2671 }
 0x140   :  { %v643_v34 = vmul.f32 %v2672_v33, %v2670_v31  ;;  %v245_v31 = vcombine.low %v169_v13, %v170_v15 }
 0x142   :  { %726 = vmatmul.mubr.f32.vlgmr.msra.gmra.mrb[2].mxu0 %v643_v34  ;;  %797 = vmatmul.mubr.f32.vlgmr.msra.gmra.mrb[2].mxu1 %v643_v34  ;;  %v650_v35 = vmul.f32 %v3079_v57, %v643_v34  ;;  %v259_v47 = vrot.slane %v245_v31, %v3067_v48 }
 0x143   :  { %2267 = vmatpush1.bf16.msra.mxu0 %v2894_v10  ;;  %2299 = vmatpush1.bf16.msra.mxu1 %v2897_v14 }
 0x144   :  { %v652_v37 = vsel %vm651_vm0, %v650_v35, 0.0  ;;  %2269 = vmatprep.subr.bf16.mxu0 %v2901_v18  ;;  %2301 = vmatprep.subr.bf16.mxu1 %v2903_v19  ;;  %v260_v60 = vcombine.low %v252_v44, %v259_v47 }
 0x145   :  { %653 = vadd.xlane.f32.xlu0 %v652_v37  ;;  %930 = vmatprep.mubr.f32.mxu0 %v3441_v0 }
 0x146   :  { %1001 = vmatprep.mubr.f32.mxu1 %v3441_v0 }
 0x147   :  { %2271 = vmatpush1.bf16.msra.mxu0 %v2906_v23  ;;  %2303 = vmatpush1.bf16.msra.mxu1 %v2910_v27 }
 0x148   :  { %2273 = vmatprep.subr.bf16.mxu0 %v2912_v28  ;;  %2305 = vmatprep.subr.bf16.mxu1 %v2914_v32 }
 0x14b   :  { %2275 = vmatpush1.bf16.msra.mxu0 %v2917_v36  ;;  %2307 = vmatpush1.bf16.msra.mxu1 %v2921_v40 }
 0x14c   :  { %2277 = vmatprep.subr.bf16.mxu0 %v2923_v41  ;;  %2309 = vmatprep.subr.bf16.mxu1 %v2926_v45 }
 0x14f   :  { %2279 = vmatpush1.bf16.msra.mxu0 %v2929_v52  ;;  %2311 = vmatpush1.bf16.msra.mxu1 %v2933_v53 }
 0x150   :  { %2281 = vmatprep.subr.bf16.mxu0 %v2935_v54  ;;  %2313 = vmatprep.subr.bf16.mxu1 %v2938_v58 }
 0x153   :  { %2283 = vmatpush1.bf16.msra.mxu0 %v2941_v1  ;;  %2315 = vmatpush1.bf16.msra.mxu1 %v2945_v2 }
 0x154   :  { %2285 = vmatprep.subr.bf16.mxu0 %v2947_v3  ;;  %2317 = vmatprep.subr.bf16.mxu1 %v2950_v8 }
 0x157   :  { %2287 = vmatpush1.bf16.msra.mxu0 %v2953_v17  ;;  %2319 = vmatpush1.bf16.msra.mxu1 %v2957_v21 }
 0x158   :  { %2289 = vmatprep.subr.bf16.mxu0 %v2959_v22  ;;  %2321 = vmatprep.subr.bf16.mxu1 %v2965_v29 }
 0x15b   :  { %2291 = vmatpush1.bf16.msra.mxu0 %v2971_v38  ;;  %2323 = vmatpush1.bf16.msra.mxu1 %v2975_v39 }
 0x15c   :  { %2293 = vmatprep.subr.bf16.mxu0 %v2977_v42  ;;  %2325 = vmatprep.subr.bf16.mxu1 %v2980_v46 }
 0x15f   :  { %2295 = vmatpush1.bf16.msra.mxu0 %v2986_v50  ;;  %2327 = vmatpush1.bf16.msra.mxu1 %v2990_v51 }
 0x160   :  { %2329 = vmatprep.subr.bf16.mxu0 %v2890_v5  ;;  %2361 = vmatprep.subr.bf16.mxu1 %v2892_v9 }
 0x215   :  { %v727_v33 = vpop.f32.mrb[2].mxu0  ;;  %v798_v34 = vpop.f32.mrb[2].mxu1 }
 0x216   :  { %v729_v35 = vpop.f32.mrb[3].mxu0  ;;  %v800_v37 = vpop.f32.mrb[3].mxu1 }
 0x217   :  { %v807_v43 = vcombine.low %v727_v33, %v729_v35  ;;  %v808_v49 = vcombine.low %v798_v34, %v800_v37 }
 0x219   :  { %v815_v55 = vrot.slane %v807_v43, %v3067_v48  ;;  %v822_v59 = vrot.slane %v808_v49, %v3067_v48 }
 0x21b   :  { %v823_v61 = vcombine.low %v815_v55, %v822_v59 }
 0x21d   :  { %v825_v56 = vadd.f32 %v823_v61, %v260_v60 }
 0x21f   :  { %v2115_v62 = vmul.f32 -1.442695, %v825_v56  ;;  %v833_v63 = vrot.slane %v825_v56, 2  ;;  %v844_v13 = vrot.slane %v825_v56, 6  ;;  %v841_v35 = vrot.slane %v825_v56, 4 }
 0x221   :  { %2673 = vpow2.f32 %v2115_v62  ;;  %v2116_v12 = vmul.f32 -1.442695, %v833_v63  ;;  %v2117_v15 = vmul.f32 -1.442695, %v844_v13  ;;  %v61_v63 = vpop.permute.xlu1 %60 }
 0x222   :  { %v118_v13 = vmul.f32 %v3042_v6, %v61_v63 }
 0x223   :  { %2675 = vpow2.f32 %v2116_v12  ;;  %v117_v12 = vmul.f32 %v3040_v4, %v61_v63 }
 0x224   :  { %2677 = vpow2.f32 %v2117_v15  ;;  %v119_v15 = vmul.f32 %v3044_v7, %v61_v63 }
 0x22b   :  { %v2674_v33 = vpop.eup %2673 }
 0x22c   :  { %v829_v26 = vadd.f32 1.0, %v2674_v33  ;;  %v120_v33 = vmul.f32 %v3046_v11, %v61_v63 }
 0x22d   :  { %v2676_v0 = vpop.eup %2675 }
 0x22e   :  { %2679 = vrcp.f32 %v829_v26  ;;  %v838_v31 = vadd.f32 1.0, %v2676_v0  ;;  %v2678_v34 = vpop.eup %2677  ;;  %v172_v26 = vadd.f32 %v3053_v20, %v118_v13 }
 0x22f   :  { %2681 = vtanh.f32 %v841_v35  ;;  %v849_v47 = vadd.f32 1.0, %v2678_v34  ;;  %v171_v35 = vadd.f32 %v3051_v16, %v117_v12  ;;  %v174_v34 = vadd.f32 %v3057_v25, %v120_v33 }
 0x230   :  { %2683 = vrcp.f32 %v838_v31  ;;  %v173_v31 = vadd.f32 %v3055_v24, %v119_v15 }
 0x231   :  { %2685 = vrcp.f32 %v849_v47 }
 0x238   :  { %v2680_v37 = vpop.eup %2679 }
 0x239   :  { %v2682_v43 = vpop.eup %2681 }
 0x23a   :  { %v2684_v44 = vpop.eup %2683  ;;  %v853_v55 = vmul.f32 %v2682_v43, %v2680_v37  ;;  %v261_v37 = vcombine.low %v171_v35, %v172_v26  ;;  %v262_v43 = vcombine.low %v173_v31, %v174_v34 }
 0x23b   :  { %v852_v49 = vmul.f32 %v2684_v44, %v3073_v30  ;;  %v2686_v56 = vpop.eup %2685  ;;  %v3449_v30 = vmov 0.0  }
 0x23d   :  { %v3142_v59 = vadd.f32 %v853_v55, %v852_v49  ;;  %v269_v49 = vrot.slane %v261_v37, %v3067_v48  ;;  %v276_v55 = vrot.slane %v262_v43, %v3067_v48 }
 0x23f   :  { %2687 = vtanh.f32 %v3142_v59  ;;  %v277_v63 = vcombine.low %v269_v49, %v276_v55 }
 0x249   :  { %v2688_v60 = vpop.eup %2687 }
 0x24a   :  { %v856_v61 = vmul.f32 %v2688_v60, %v2686_v56 }
 0x24c   :  { %931 = vmatmul.mubr.f32.vlgmr.msra.gmra.mrb[4].mxu0 %v856_v61  ;;  %1002 = vmatmul.mubr.f32.vlgmr.msra.gmra.mrb[4].mxu1 %v856_v61  ;;  %v857_v0 = vmul.f32 %v3079_v57, %v856_v61 }
 0x24d   :  { %2331 = vmatpush1.bf16.msra.mxu0 %v2894_v10  ;;  %2363 = vmatpush1.bf16.msra.mxu1 %v2897_v14 }
 0x24e   :  { %v858_v62 = vsel %vm651_vm0, %v857_v0, 0.0  ;;  %2333 = vmatprep.subr.bf16.mxu0 %v2901_v18  ;;  %2365 = vmatprep.subr.bf16.mxu1 %v2903_v19 }
 0x24f   :  { %859 = vadd.xlane.f32.xlu1 %v858_v62  ;;  %1135 = vmatprep.mubr.f32.mxu0 %v3449_v30 }
 0x250   :  { %1206 = vmatprep.mubr.f32.mxu1 %v3449_v30 }
 0x251   :  { %2335 = vmatpush1.bf16.msra.mxu0 %v2906_v23  ;;  %2367 = vmatpush1.bf16.msra.mxu1 %v2910_v27 }
 0x252   :  { %2337 = vmatprep.subr.bf16.mxu0 %v2912_v28  ;;  %2369 = vmatprep.subr.bf16.mxu1 %v2914_v32 }
 0x255   :  { %2339 = vmatpush1.bf16.msra.mxu0 %v2917_v36  ;;  %2371 = vmatpush1.bf16.msra.mxu1 %v2921_v40 }
 0x256   :  { %2341 = vmatprep.subr.bf16.mxu0 %v2923_v41  ;;  %2373 = vmatprep.subr.bf16.mxu1 %v2926_v45 }
 0x259   :  { %2343 = vmatpush1.bf16.msra.mxu0 %v2929_v52  ;;  %2375 = vmatpush1.bf16.msra.mxu1 %v2933_v53 }
 0x25a   :  { %2345 = vmatprep.subr.bf16.mxu0 %v2935_v54  ;;  %2377 = vmatprep.subr.bf16.mxu1 %v2938_v58 }
 0x25d   :  { %2347 = vmatpush1.bf16.msra.mxu0 %v2941_v1  ;;  %2379 = vmatpush1.bf16.msra.mxu1 %v2945_v2 }
 0x25e   :  { %2349 = vmatprep.subr.bf16.mxu0 %v2947_v3  ;;  %2381 = vmatprep.subr.bf16.mxu1 %v2950_v8 }
 0x261   :  { %2351 = vmatpush1.bf16.msra.mxu0 %v2953_v17  ;;  %2383 = vmatpush1.bf16.msra.mxu1 %v2957_v21 }
 0x262   :  { %2353 = vmatprep.subr.bf16.mxu0 %v2959_v22  ;;  %2385 = vmatprep.subr.bf16.mxu1 %v2965_v29 }
 0x265   :  { %2355 = vmatpush1.bf16.msra.mxu0 %v2971_v38  ;;  %2387 = vmatpush1.bf16.msra.mxu1 %v2975_v39 }
 0x266   :  { %2357 = vmatprep.subr.bf16.mxu0 %v2977_v42  ;;  %2389 = vmatprep.subr.bf16.mxu1 %v2980_v46 }
 0x269   :  { %2359 = vmatpush1.bf16.msra.mxu0 %v2986_v50  ;;  %2391 = vmatpush1.bf16.msra.mxu1 %v2990_v51 }
 0x26a   :  { %2393 = vmatprep.subr.bf16.mxu0 %v2890_v5  ;;  %2425 = vmatprep.subr.bf16.mxu1 %v2892_v9 }
 0x31f   :  { %v932_v44 = vpop.f32.mrb[4].mxu0  ;;  %v1003_v47 = vpop.f32.mrb[4].mxu1 }
 0x320   :  { %v934_v56 = vpop.f32.mrb[5].mxu0  ;;  %v1005_v60 = vpop.f32.mrb[5].mxu1 }
 0x321   :  { %v1012_v61 = vcombine.low %v932_v44, %v934_v56  ;;  %v1013_v0 = vcombine.low %v1003_v47, %v1005_v60 }
 0x323   :  { %v1020_v62 = vrot.slane %v1012_v61, %v3067_v48  ;;  %v1027_v12 = vrot.slane %v1013_v0, %v3067_v48 }
 0x325   :  { %v1028_v13 = vcombine.low %v1020_v62, %v1027_v12 }
 0x327   :  { %v1030_v15 = vadd.f32 %v1028_v13, %v277_v63 }
 0x329   :  { %v2118_v33 = vmul.f32 -1.442695, %v1030_v15  ;;  %v1038_v35 = vrot.slane %v1030_v15, 2  ;;  %v1049_v31 = vrot.slane %v1030_v15, 6  ;;  %v1046_v43 = vrot.slane %v1030_v15, 4 }
 0x32b   :  { %2689 = vpow2.f32 %v2118_v33  ;;  %v2119_v26 = vmul.f32 -1.442695, %v1038_v35  ;;  %v2120_v34 = vmul.f32 -1.442695, %v1049_v31 }
 0x32d   :  { %2691 = vpow2.f32 %v2119_v26 }
 0x32e   :  { %2693 = vpow2.f32 %v2120_v34 }
 0x335   :  { %v2690_v37 = vpop.eup %2689 }
 0x336   :  { %v1034_v25 = vadd.f32 1.0, %v2690_v37  ;;  %v3450_v37 = vld [vmem:[#allocation10_spill] sm:$0xff] }
 0x337   :  { %v2692_v24 = vpop.eup %2691 }
 0x338   :  { %2695 = vrcp.f32 %v1034_v25  ;;  %v1043_v44 = vadd.f32 1.0, %v2692_v24  ;;  %v2694_v47 = vpop.eup %2693 }
 0x339   :  { %2697 = vtanh.f32 %v1046_v43  ;;  %v1054_v60 = vadd.f32 1.0, %v2694_v47 }
 0x33a   :  { %2699 = vrcp.f32 %v1043_v44  ;;  %v3451_v44 = vld [vmem:[#allocation11_spill] sm:$0xff] }
 0x33b   :  { %2701 = vrcp.f32 %v1054_v60 }
 0x342   :  { %v2696_v49 = vpop.eup %2695 }
 0x343   :  { %v2698_v55 = vpop.eup %2697 }
 0x344   :  { %v2700_v56 = vpop.eup %2699  ;;  %v1058_v0 = vmul.f32 %v2698_v55, %v2696_v49 }
 0x345   :  { %v1057_v61 = vmul.f32 %v2700_v56, %v3142_v59  ;;  %v2702_v63 = vpop.eup %2701  ;;  %v66_v59 = vpop.permute.xlu1 %65 }
 0x346   :  { %v121_v15 = vmul.f32 %v3040_v4, %v66_v59  ;;  %v122_v33 = vmul.f32 %v3042_v6, %v66_v59  ;;  %v123_v35 = vmul.f32 %v3044_v7, %v66_v59  ;;  %v124_v26 = vmul.f32 %v3046_v11, %v66_v59 }
 0x347   :  { %v3194_v62 = vadd.f32 %v1058_v0, %v1057_v61 }
 0x348   :  { %v175_v31 = vadd.f32 %v3051_v16, %v121_v15  ;;  %v176_v34 = vadd.f32 %v3053_v20, %v122_v33  ;;  %v177_v43 = vadd.f32 %v3450_v37, %v123_v35  ;;  %v178_v47 = vadd.f32 %v3451_v44, %v124_v26 }
 0x349   :  { %2703 = vtanh.f32 %v3194_v62 }
 0x34a   :  { %v278_v49 = vcombine.low %v175_v31, %v176_v34  ;;  %v279_v55 = vcombine.low %v177_v43, %v178_v47 }
 0x353   :  { %v2704_v12 = vpop.eup %2703 }
 0x354   :  { %v1061_v13 = vmul.f32 %v2704_v12, %v2702_v63  ;;  %v286_v12 = vrot.slane %v278_v49, %v3067_v48 }
 0x356   :  { %1136 = vmatmul.mubr.f32.vlgmr.msra.gmra.mrb[6].mxu0 %v1061_v13  ;;  %1207 = vmatmul.mubr.f32.vlgmr.msra.gmra.mrb[6].mxu1 %v1061_v13  ;;  %v1062_v24 = vmul.f32 %v3079_v57, %v1061_v13  ;;  %v293_v13 = vrot.slane %v279_v55, %v3067_v48 }
 0x357   :  { %2395 = vmatpush1.bf16.msra.mxu0 %v2894_v10  ;;  %2427 = vmatpush1.bf16.msra.mxu1 %v2897_v14 }
 0x358   :  { %v1063_v25 = vsel %vm651_vm0, %v1062_v24, 0.0  ;;  %2397 = vmatprep.subr.bf16.mxu0 %v2901_v18  ;;  %2429 = vmatprep.subr.bf16.mxu1 %v2903_v19  ;;  %v294_v15 = vcombine.low %v286_v12, %v293_v13 }
 0x359   :  { %1064 = vadd.xlane.f32.xlu0 %v1063_v25  ;;  %1340 = vmatprep.mubr.f32.mxu0 %v3449_v30 }
 0x35a   :  { %1411 = vmatprep.mubr.f32.mxu1 %v3449_v30 }
 0x35b   :  { %2399 = vmatpush1.bf16.msra.mxu0 %v2906_v23  ;;  %2431 = vmatpush1.bf16.msra.mxu1 %v2910_v27 }
 0x35c   :  { %2401 = vmatprep.subr.bf16.mxu0 %v2912_v28  ;;  %2433 = vmatprep.subr.bf16.mxu1 %v2914_v32 }
 0x35f   :  { %2403 = vmatpush1.bf16.msra.mxu0 %v2917_v36  ;;  %2435 = vmatpush1.bf16.msra.mxu1 %v2921_v40 }
 0x360   :  { %2405 = vmatprep.subr.bf16.mxu0 %v2923_v41  ;;  %2437 = vmatprep.subr.bf16.mxu1 %v2926_v45 }
 0x363   :  { %2407 = vmatpush1.bf16.msra.mxu0 %v2929_v52  ;;  %2439 = vmatpush1.bf16.msra.mxu1 %v2933_v53 }
 0x364   :  { %2409 = vmatprep.subr.bf16.mxu0 %v2935_v54  ;;  %2441 = vmatprep.subr.bf16.mxu1 %v2938_v58 }
 0x367   :  { %2411 = vmatpush1.bf16.msra.mxu0 %v2941_v1  ;;  %2443 = vmatpush1.bf16.msra.mxu1 %v2945_v2 }
 0x368   :  { %2413 = vmatprep.subr.bf16.mxu0 %v2947_v3  ;;  %2445 = vmatprep.subr.bf16.mxu1 %v2950_v8 }
 0x36b   :  { %2415 = vmatpush1.bf16.msra.mxu0 %v2953_v17  ;;  %2447 = vmatpush1.bf16.msra.mxu1 %v2957_v21 }
 0x36c   :  { %2417 = vmatprep.subr.bf16.mxu0 %v2959_v22  ;;  %2449 = vmatprep.subr.bf16.mxu1 %v2965_v29 }
 0x36f   :  { %2419 = vmatpush1.bf16.msra.mxu0 %v2971_v38  ;;  %2451 = vmatpush1.bf16.msra.mxu1 %v2975_v39 }
 0x370   :  { %2421 = vmatprep.subr.bf16.mxu0 %v2977_v42  ;;  %2453 = vmatprep.subr.bf16.mxu1 %v2980_v46 }
 0x373   :  { %2423 = vmatpush1.bf16.msra.mxu0 %v2986_v50  ;;  %2455 = vmatpush1.bf16.msra.mxu1 %v2990_v51 }
 0x374   :  { %2457 = vmatprep.subr.bf16.mxu0 %v2890_v5  ;;  %2489 = vmatprep.subr.bf16.mxu1 %v2892_v9 }
 0x429   :  { %v1137_v56 = vpop.f32.mrb[6].mxu0  ;;  %v1208_v60 = vpop.f32.mrb[6].mxu1 }
 0x42a   :  { %v1139_v61 = vpop.f32.mrb[7].mxu0  ;;  %v1210_v0 = vpop.f32.mrb[7].mxu1 }
 0x42b   :  { %v1217_v63 = vcombine.low %v1137_v56, %v1139_v61  ;;  %v1218_v24 = vcombine.low %v1208_v60, %v1210_v0 }
 0x42d   :  { %v1225_v25 = vrot.slane %v1217_v63, %v3067_v48  ;;  %v1232_v59 = vrot.slane %v1218_v24, %v3067_v48 }
 0x42f   :  { %v1233_v33 = vcombine.low %v1225_v25, %v1232_v59 }
 0x431   :  { %v1235_v35 = vadd.f32 %v1233_v33, %v294_v15 }
 0x433   :  { %v2121_v26 = vmul.f32 -1.442695, %v1235_v35  ;;  %v1243_v31 = vrot.slane %v1235_v35, 2  ;;  %v1254_v43 = vrot.slane %v1235_v35, 6  ;;  %v1251_v61 = vrot.slane %v1235_v35, 4 }
 0x435   :  { %2705 = vpow2.f32 %v2121_v26  ;;  %v2122_v34 = vmul.f32 -1.442695, %v1243_v31  ;;  %v2123_v47 = vmul.f32 -1.442695, %v1254_v43 }
 0x437   :  { %2707 = vpow2.f32 %v2122_v34 }
 0x438   :  { %2709 = vpow2.f32 %v2123_v47 }
 0x43f   :  { %v2706_v56 = vpop.eup %2705 }
 0x440   :  { %v1239_v49 = vadd.f32 1.0, %v2706_v56 }
 0x441   :  { %v2708_v44 = vpop.eup %2707 }
 0x442   :  { %2711 = vrcp.f32 %v1239_v49  ;;  %v1248_v55 = vadd.f32 1.0, %v2708_v44  ;;  %v2710_v60 = vpop.eup %2709 }
 0x443   :  { %2713 = vtanh.f32 %v1251_v61  ;;  %v1259_v13 = vadd.f32 1.0, %v2710_v60 }
 0x444   :  { %2715 = vrcp.f32 %v1248_v55  ;;  %v3452_v55 = vld [vmem:[#allocation11_spill] sm:$0xff] }
 0x445   :  { %2717 = vrcp.f32 %v1259_v13 }
 0x44c   :  { %v2712_v0 = vpop.eup %2711 }
 0x44d   :  { %v2714_v63 = vpop.eup %2713 }
 0x44e   :  { %v2716_v12 = vpop.eup %2715  ;;  %v1263_v25 = vmul.f32 %v2714_v63, %v2712_v0 }
 0x44f   :  { %v1262_v24 = vmul.f32 %v2716_v12, %v3194_v62  ;;  %v2718_v15 = vpop.eup %2717  ;;  %v71_v62 = vpop.permute.xlu0 %70 }
 0x450   :  { %v125_v31 = vmul.f32 %v3040_v4, %v71_v62  ;;  %v126_v34 = vmul.f32 %v3042_v6, %v71_v62  ;;  %v127_v43 = vmul.f32 %v3044_v7, %v71_v62  ;;  %v128_v47 = vmul.f32 %v3046_v11, %v71_v62 }
 0x451   :  { %v3246_v59 = vadd.f32 %v1263_v25, %v1262_v24 }
 0x452   :  { %v179_v56 = vadd.f32 %v3051_v16, %v125_v31  ;;  %v180_v61 = vadd.f32 %v3053_v20, %v126_v34  ;;  %v181_v49 = vadd.f32 %v3450_v37, %v127_v43  ;;  %v182_v60 = vadd.f32 %v3452_v55, %v128_v47 }
 0x453   :  { %2719 = vtanh.f32 %v3246_v59 }
 0x454   :  { %v295_v0 = vcombine.low %v179_v56, %v180_v61  ;;  %v296_v63 = vcombine.low %v181_v49, %v182_v60 }
 0x45d   :  { %v2720_v33 = vpop.eup %2719 }
 0x45e   :  { %v1266_v35 = vmul.f32 %v2720_v33, %v2718_v15  ;;  %v303_v33 = vrot.slane %v295_v0, %v3067_v48 }
 0x460   :  { %1341 = vmatmul.mubr.f32.vlgmr.msra.gmra.mrb[8].mxu0 %v1266_v35  ;;  %1412 = vmatmul.mubr.f32.vlgmr.msra.gmra.mrb[8].mxu1 %v1266_v35  ;;  %v1267_v44 = vmul.f32 %v3079_v57, %v1266_v35  ;;  %v310_v35 = vrot.slane %v296_v63, %v3067_v48 }
 0x461   :  { %2459 = vmatpush1.bf16.msra.mxu0 %v2894_v10  ;;  %2491 = vmatpush1.bf16.msra.mxu1 %v2897_v14 }
 0x462   :  { %v1268_v26 = vsel %vm651_vm0, %v1267_v44, 0.0  ;;  %2461 = vmatprep.subr.bf16.mxu0 %v2901_v18  ;;  %2493 = vmatprep.subr.bf16.mxu1 %v2903_v19  ;;  %v311_v31 = vcombine.low %v303_v33, %v310_v35 }
 0x463   :  { %1269 = vadd.xlane.f32.xlu0 %v1268_v26  ;;  %1545 = vmatprep.mubr.f32.mxu0 %v3449_v30 }
 0x464   :  { %1616 = vmatprep.mubr.f32.mxu1 %v3449_v30 }
 0x465   :  { %2463 = vmatpush1.bf16.msra.mxu0 %v2906_v23  ;;  %2495 = vmatpush1.bf16.msra.mxu1 %v2910_v27 }
 0x466   :  { %2465 = vmatprep.subr.bf16.mxu0 %v2912_v28  ;;  %2497 = vmatprep.subr.bf16.mxu1 %v2914_v32 }
 0x469   :  { %2467 = vmatpush1.bf16.msra.mxu0 %v2917_v36  ;;  %2499 = vmatpush1.bf16.msra.mxu1 %v2921_v40 }
 0x46a   :  { %2469 = vmatprep.subr.bf16.mxu0 %v2923_v41  ;;  %2501 = vmatprep.subr.bf16.mxu1 %v2926_v45 }
 0x46d   :  { %2471 = vmatpush1.bf16.msra.mxu0 %v2929_v52  ;;  %2503 = vmatpush1.bf16.msra.mxu1 %v2933_v53 }
 0x46e   :  { %2473 = vmatprep.subr.bf16.mxu0 %v2935_v54  ;;  %2505 = vmatprep.subr.bf16.mxu1 %v2938_v58 }
 0x471   :  { %2475 = vmatpush1.bf16.msra.mxu0 %v2941_v1  ;;  %2507 = vmatpush1.bf16.msra.mxu1 %v2945_v2 }
 0x472   :  { %2477 = vmatprep.subr.bf16.mxu0 %v2947_v3  ;;  %2509 = vmatprep.subr.bf16.mxu1 %v2950_v8 }
 0x475   :  { %2479 = vmatpush1.bf16.msra.mxu0 %v2953_v17  ;;  %2511 = vmatpush1.bf16.msra.mxu1 %v2957_v21 }
 0x476   :  { %2481 = vmatprep.subr.bf16.mxu0 %v2959_v22  ;;  %2513 = vmatprep.subr.bf16.mxu1 %v2965_v29 }
 0x479   :  { %2483 = vmatpush1.bf16.msra.mxu0 %v2971_v38  ;;  %2515 = vmatpush1.bf16.msra.mxu1 %v2975_v39 }
 0x47a   :  { %2485 = vmatprep.subr.bf16.mxu0 %v2977_v42  ;;  %2517 = vmatprep.subr.bf16.mxu1 %v2980_v46 }
 0x47d   :  { %2487 = vmatpush1.bf16.msra.mxu0 %v2986_v50  ;;  %2519 = vmatpush1.bf16.msra.mxu1 %v2990_v51 }
 0x47e   :  { %2521 = vmatprep.subr.bf16.mxu0 %v2890_v5  ;;  %2553 = vmatprep.subr.bf16.mxu1 %v2892_v9 }
 0x533   :  { %v1342_v12 = vpop.f32.mrb[8].mxu0  ;;  %v1413_v13 = vpop.f32.mrb[8].mxu1 }
 0x534   :  { %v1344_v24 = vpop.f32.mrb[9].mxu0  ;;  %v1415_v25 = vpop.f32.mrb[9].mxu1 }
 0x535   :  { %v1422_v15 = vcombine.low %v1342_v12, %v1344_v24  ;;  %v1423_v44 = vcombine.low %v1413_v13, %v1415_v25 }
 0x537   :  { %v1430_v26 = vrot.slane %v1422_v15, %v3067_v48  ;;  %v1437_v62 = vrot.slane %v1423_v44, %v3067_v48 }
 0x539   :  { %v1438_v34 = vcombine.low %v1430_v26, %v1437_v62 }
 0x53b   :  { %v1440_v43 = vadd.f32 %v1438_v34, %v311_v31 }
 0x53d   :  { %v2124_v47 = vmul.f32 -1.442695, %v1440_v43  ;;  %v1448_v56 = vrot.slane %v1440_v43, 2  ;;  %v1459_v49 = vrot.slane %v1440_v43, 6  ;;  %v1456_v24 = vrot.slane %v1440_v43, 4 }
 0x53f   :  { %2721 = vpow2.f32 %v2124_v47  ;;  %v2125_v61 = vmul.f32 -1.442695, %v1448_v56  ;;  %v2126_v60 = vmul.f32 -1.442695, %v1459_v49 }
 0x541   :  { %2723 = vpow2.f32 %v2125_v61 }
 0x542   :  { %2725 = vpow2.f32 %v2126_v60 }
 0x549   :  { %v2722_v12 = vpop.eup %2721 }
 0x54a   :  { %v1444_v0 = vadd.f32 1.0, %v2722_v12 }
 0x54b   :  { %v2724_v55 = vpop.eup %2723 }
 0x54c   :  { %2727 = vrcp.f32 %v1444_v0  ;;  %v1453_v63 = vadd.f32 1.0, %v2724_v55  ;;  %v2726_v13 = vpop.eup %2725 }
 0x54d   :  { %2729 = vtanh.f32 %v1456_v24  ;;  %v1464_v35 = vadd.f32 1.0, %v2726_v13 }
 0x54e   :  { %2731 = vrcp.f32 %v1453_v63  ;;  %v3453_v63 = vld [vmem:[#allocation11_spill] sm:$0xff] }
 0x54f   :  { %2733 = vrcp.f32 %v1464_v35 }
 0x556   :  { %v2728_v25 = vpop.eup %2727 }
 0x557   :  { %v2730_v15 = vpop.eup %2729 }
 0x558   :  { %v2732_v33 = vpop.eup %2731  ;;  %v1468_v26 = vmul.f32 %v2730_v15, %v2728_v25 }
 0x559   :  { %v1467_v44 = vmul.f32 %v2732_v33, %v3246_v59  ;;  %v2734_v31 = vpop.eup %2733  ;;  %v76_v59 = vpop.permute.xlu1 %75 }
 0x55a   :  { %v129_v56 = vmul.f32 %v3040_v4, %v76_v59  ;;  %v130_v61 = vmul.f32 %v3042_v6, %v76_v59  ;;  %v131_v49 = vmul.f32 %v3044_v7, %v76_v59  ;;  %v132_v60 = vmul.f32 %v3046_v11, %v76_v59 }
 0x55b   :  { %v3298_v62 = vadd.f32 %v1468_v26, %v1467_v44 }
 0x55c   :  { %v183_v12 = vadd.f32 %v3051_v16, %v129_v56  ;;  %v184_v24 = vadd.f32 %v3053_v20, %v130_v61  ;;  %v185_v0 = vadd.f32 %v3450_v37, %v131_v49  ;;  %v186_v13 = vadd.f32 %v3453_v63, %v132_v60 }
 0x55d   :  { %2735 = vtanh.f32 %v3298_v62 }
 0x55e   :  { %v313_v25 = vcombine.low %v185_v0, %v186_v13 }
 0x567   :  { %v2736_v34 = vpop.eup %2735 }
 0x568   :  { %v1471_v43 = vmul.f32 %v2736_v34, %v2734_v31  ;;  %v327_v31 = vrot.slane %v313_v25, %v3067_v48 }
 0x56a   :  { %1546 = vmatmul.mubr.f32.vlgmr.msra.gmra.mrb[10].mxu0 %v1471_v43  ;;  %1617 = vmatmul.mubr.f32.vlgmr.msra.gmra.mrb[10].mxu1 %v1471_v43  ;;  %v1472_v55 = vmul.f32 %v3079_v57, %v1471_v43 }
 0x56b   :  { %2523 = vmatpush1.bf16.msra.mxu0 %v2894_v10  ;;  %2555 = vmatpush1.bf16.msra.mxu1 %v2897_v14 }
 0x56c   :  { %v1473_v47 = vsel %vm651_vm0, %v1472_v55, 0.0  ;;  %2525 = vmatprep.subr.bf16.mxu0 %v2901_v18  ;;  %2557 = vmatprep.subr.bf16.mxu1 %v2903_v19 }
 0x56d   :  { %1474 = vadd.xlane.f32.xlu1 %v1473_v47  ;;  %1750 = vmatprep.mubr.f32.mxu0 %v3449_v30 }
 0x56e   :  { %1821 = vmatprep.mubr.f32.mxu1 %v3449_v30 }
 0x56f   :  { %2527 = vmatpush1.bf16.msra.mxu0 %v2906_v23  ;;  %2559 = vmatpush1.bf16.msra.mxu1 %v2910_v27 }
 0x570   :  { %2529 = vmatprep.subr.bf16.mxu0 %v2912_v28  ;;  %2561 = vmatprep.subr.bf16.mxu1 %v2914_v32 }
 0x573   :  { %2531 = vmatpush1.bf16.msra.mxu0 %v2917_v36  ;;  %2563 = vmatpush1.bf16.msra.mxu1 %v2921_v40 }
 0x574   :  { %2533 = vmatprep.subr.bf16.mxu0 %v2923_v41  ;;  %2565 = vmatprep.subr.bf16.mxu1 %v2926_v45 }
 0x577   :  { %2535 = vmatpush1.bf16.msra.mxu0 %v2929_v52  ;;  %2567 = vmatpush1.bf16.msra.mxu1 %v2933_v53 }
 0x578   :  { %2537 = vmatprep.subr.bf16.mxu0 %v2935_v54  ;;  %2569 = vmatprep.subr.bf16.mxu1 %v2938_v58 }
 0x57b   :  { %2539 = vmatpush1.bf16.msra.mxu0 %v2941_v1  ;;  %2571 = vmatpush1.bf16.msra.mxu1 %v2945_v2 }
 0x57c   :  { %2541 = vmatprep.subr.bf16.mxu0 %v2947_v3  ;;  %2573 = vmatprep.subr.bf16.mxu1 %v2950_v8 }
 0x57f   :  { %2543 = vmatpush1.bf16.msra.mxu0 %v2953_v17  ;;  %2575 = vmatpush1.bf16.msra.mxu1 %v2957_v21 }
 0x580   :  { %2545 = vmatprep.subr.bf16.mxu0 %v2959_v22  ;;  %2577 = vmatprep.subr.bf16.mxu1 %v2965_v29 }
 0x583   :  { %2547 = vmatpush1.bf16.msra.mxu0 %v2971_v38  ;;  %2579 = vmatpush1.bf16.msra.mxu1 %v2975_v39 }
 0x584   :  { %2549 = vmatprep.subr.bf16.mxu0 %v2977_v42  ;;  %2581 = vmatprep.subr.bf16.mxu1 %v2980_v46 }
 0x587   :  { %2551 = vmatpush1.bf16.msra.mxu0 %v2986_v50  ;;  %2583 = vmatpush1.bf16.msra.mxu1 %v2990_v51 }
 0x588   :  { %2585 = vmatprep.subr.bf16.mxu0 %v2890_v5  ;;  %2617 = vmatprep.subr.bf16.mxu1 %v2892_v9  ;;  %v312_v5 = vcombine.low %v183_v12, %v184_v24 }
 0x58a   :  { %v320_v26 = vrot.slane %v312_v5, %v3067_v48 }
 0x58c   :  { %v328_v47 = vcombine.low %v320_v26, %v327_v31 }
 0x63d   :  { %v1547_v9 = vpop.f32.mrb[10].mxu0  ;;  %v1618_v15 = vpop.f32.mrb[10].mxu1 }
 0x63e   :  { %v1549_v33 = vpop.f32.mrb[11].mxu0  ;;  %v1620_v35 = vpop.f32.mrb[11].mxu1 }
 0x63f   :  { %v1627_v44 = vcombine.low %v1547_v9, %v1549_v33  ;;  %v1628_v34 = vcombine.low %v1618_v15, %v1620_v35 }
 0x641   :  { %v1635_v43 = vrot.slane %v1627_v44, %v3067_v48  ;;  %v1642_v55 = vrot.slane %v1628_v34, %v3067_v48 }
 0x643   :  { %v1643_v59 = vcombine.low %v1635_v43, %v1642_v55 }
 0x645   :  { %v1645_v56 = vadd.f32 %v1643_v59, %v328_v47 }
 0x647   :  { %v2127_v61 = vmul.f32 -1.442695, %v1645_v56  ;;  %v1653_v49 = vrot.slane %v1645_v56, 2  ;;  %v1664_v12 = vrot.slane %v1645_v56, 6  ;;  %v1661_v13 = vrot.slane %v1645_v56, 4 }
 0x649   :  { %2737 = vpow2.f32 %v2127_v61  ;;  %v2128_v60 = vmul.f32 -1.442695, %v1653_v49  ;;  %v2129_v24 = vmul.f32 -1.442695, %v1664_v12 }
 0x64b   :  { %2739 = vpow2.f32 %v2128_v60 }
 0x64c   :  { %2741 = vpow2.f32 %v2129_v24 }
 0x653   :  { %v2738_v0 = vpop.eup %2737 }
 0x654   :  { %v1649_v5 = vadd.f32 1.0, %v2738_v0 }
 0x655   :  { %v2740_v9 = vpop.eup %2739 }
 0x656   :  { %2743 = vrcp.f32 %v1649_v5  ;;  %v1658_v25 = vadd.f32 1.0, %v2740_v9  ;;  %v2742_v15 = vpop.eup %2741 }
 0x657   :  { %2745 = vtanh.f32 %v1661_v13  ;;  %v1669_v26 = vadd.f32 1.0, %v2742_v15 }
 0x658   :  { %2747 = vrcp.f32 %v1658_v25 }
 0x659   :  { %2749 = vrcp.f32 %v1669_v26 }
 0x660   :  { %v2744_v33 = vpop.eup %2743 }
 0x661   :  { %v2746_v35 = vpop.eup %2745 }
 0x662   :  { %v2748_v44 = vpop.eup %2747  ;;  %v1673_v34 = vmul.f32 %v2746_v35, %v2744_v33 }
 0x663   :  { %v1672_v31 = vmul.f32 %v2748_v44, %v3298_v62  ;;  %v2750_v55 = vpop.eup %2749  ;;  %v2785_v44 = vld [vmem:[%s3437_s4] ss:$0 sm:$0xff] }
 0x665   :  { %v3350_v43 = vadd.f32 %v1673_v34, %v1672_v31  ;;  %v86_v34 = vpop.permute.xlu1 %85 }
 0x667   :  { %2751 = vtanh.f32 %v3350_v43 }
 0x671   :  { %v2752_v47 = vpop.eup %2751 }
 0x672   :  { %v1676_v59 = vmul.f32 %v2752_v47, %v2750_v55  ;;  %v138_v55 = vmul.f32 %v3042_v6, %v86_v34  ;;  %v139_v47 = vmul.f32 %v3044_v7, %v86_v34 }
 0x674   :  { %1751 = vmatmul.mubr.f32.vlgmr.msra.gmra.mrb[12].mxu0 %v1676_v59  ;;  %1822 = vmatmul.mubr.f32.vlgmr.msra.gmra.mrb[12].mxu1 %v1676_v59  ;;  %v1677_v56 = vmul.f32 %v3079_v57, %v1676_v59  ;;  %v140_v59 = vmul.f32 %v3046_v11, %v86_v34 }
 0x675   :  { %2587 = vmatpush1.bf16.msra.mxu0 %v2894_v10  ;;  %2619 = vmatpush1.bf16.msra.mxu1 %v2897_v14  ;;  %v81_v10 = vpop.permute.xlu0 %80 }
 0x676   :  { %v1678_v61 = vsel %vm651_vm0, %v1677_v56, 0.0  ;;  %2589 = vmatprep.subr.bf16.mxu0 %v2901_v18  ;;  %2621 = vmatprep.subr.bf16.mxu1 %v2903_v19  ;;  %v133_v14 = vmul.f32 %v3040_v4, %v81_v10  ;;  %v134_v18 = vmul.f32 %v3042_v6, %v81_v10  ;;  %v135_v19 = vmul.f32 %v3044_v7, %v81_v10 }
 0x677   :  { %1679 = vadd.xlane.f32.xlu0 %v1678_v61  ;;  %1955 = vmatprep.mubr.f32.mxu0 %v3449_v30  ;;  %v192_v61 = vadd.f32 %v3053_v20, %v138_v55 }
 0x678   :  { %2026 = vmatprep.mubr.f32.mxu1 %v3449_v30 }
 0x679   :  { %2591 = vmatpush1.bf16.msra.mxu0 %v2906_v23  ;;  %2623 = vmatpush1.bf16.msra.mxu1 %v2910_v27  ;;  %v136_v23 = vmul.f32 %v3046_v11, %v81_v10  ;;  %v187_v27 = vadd.f32 %v3051_v16, %v133_v14  ;;  %v193_v10 = vadd.f32 %v3450_v37, %v139_v47 }
 0x67a   :  { %2593 = vmatprep.subr.bf16.mxu0 %v2912_v28  ;;  %2625 = vmatprep.subr.bf16.mxu1 %v2914_v32  ;;  %v188_v28 = vadd.f32 %v3053_v20, %v134_v18  ;;  %v189_v32 = vadd.f32 %v3450_v37, %v135_v19  ;;  %v194_v14 = vadd.f32 %v3453_v63, %v140_v59 }
 0x67c   :  { %v347_v19 = vcombine.low %v193_v10, %v194_v14 }
 0x67d   :  { %2595 = vmatpush1.bf16.msra.mxu0 %v2917_v36  ;;  %2627 = vmatpush1.bf16.msra.mxu1 %v2921_v40  ;;  %v190_v36 = vadd.f32 %v3453_v63, %v136_v23  ;;  %v329_v40 = vcombine.low %v187_v27, %v188_v28 }
 0x67e   :  { %2597 = vmatprep.subr.bf16.mxu0 %v2923_v41  ;;  %2629 = vmatprep.subr.bf16.mxu1 %v2926_v45  ;;  %v361_v7 = vrot.slane %v347_v19, %v3067_v48 }
 0x67f   :  { %v330_v41 = vcombine.low %v189_v32, %v190_v36 }
 0x681   :  { %2599 = vmatpush1.bf16.msra.mxu0 %v2929_v52  ;;  %2631 = vmatpush1.bf16.msra.mxu1 %v2933_v53 }
 0x682   :  { %2601 = vmatprep.subr.bf16.mxu0 %v2935_v54  ;;  %2633 = vmatprep.subr.bf16.mxu1 %v2938_v58 }
 0x685   :  { %2603 = vmatpush1.bf16.msra.mxu0 %v2941_v1  ;;  %2635 = vmatpush1.bf16.msra.mxu1 %v2945_v2  ;;  %v337_v1 = vrot.slane %v329_v40, %v3067_v48  ;;  %v344_v2 = vrot.slane %v330_v41, %v3067_v48 }
 0x686   :  { %2605 = vmatprep.subr.bf16.mxu0 %v2947_v3  ;;  %2637 = vmatprep.subr.bf16.mxu1 %v2950_v8 }
 0x689   :  { %2607 = vmatpush1.bf16.msra.mxu0 %v2953_v17  ;;  %2639 = vmatpush1.bf16.msra.mxu1 %v2957_v21  ;;  %v345_v21 = vcombine.low %v337_v1, %v344_v2 }
 0x68a   :  { %2609 = vmatprep.subr.bf16.mxu0 %v2959_v22  ;;  %2641 = vmatprep.subr.bf16.mxu1 %v2965_v29 }
 0x68d   :  { %2611 = vmatpush1.bf16.msra.mxu0 %v2971_v38  ;;  %2643 = vmatpush1.bf16.msra.mxu1 %v2975_v39 }
 0x68e   :  { %2613 = vmatprep.subr.bf16.mxu0 %v2977_v42  ;;  %2645 = vmatprep.subr.bf16.mxu1 %v2980_v46 }
 0x691   :  { %2615 = vmatpush1.bf16.msra.mxu0 %v2986_v50  ;;  %2647 = vmatpush1.bf16.msra.mxu1 %v2990_v51 }
 0x747   :  { %v1752_v45 = vpop.f32.mrb[12].mxu0  ;;  %v1823_v52 = vpop.f32.mrb[12].mxu1 }
 0x748   :  { %v1754_v53 = vpop.f32.mrb[13].mxu0  ;;  %v1825_v54 = vpop.f32.mrb[13].mxu1 }
 0x749   :  { %v1832_v58 = vcombine.low %v1752_v45, %v1754_v53  ;;  %v1833_v3 = vcombine.low %v1823_v52, %v1825_v54 }
 0x74b   :  { %v1840_v8 = vrot.slane %v1832_v58, %v3067_v48  ;;  %v1847_v17 = vrot.slane %v1833_v3, %v3067_v48 }
 0x74d   :  { %v1848_v22 = vcombine.low %v1840_v8, %v1847_v17 }
 0x74f   :  { %v1850_v29 = vadd.f32 %v1848_v22, %v345_v21 }
 0x751   :  { %v2130_v38 = vmul.f32 -1.442695, %v1850_v29  ;;  %v1858_v39 = vrot.slane %v1850_v29, 2  ;;  %v1869_v46 = vrot.slane %v1850_v29, 6  ;;  %v1866_v57 = vrot.slane %v1850_v29, 4 }
 0x753   :  { %2753 = vpow2.f32 %v2130_v38  ;;  %v2131_v42 = vmul.f32 -1.442695, %v1858_v39  ;;  %v2132_v50 = vmul.f32 -1.442695, %v1869_v46 }
 0x755   :  { %2755 = vpow2.f32 %v2131_v42 }
 0x756   :  { %2757 = vpow2.f32 %v2132_v50 }
 0x75d   :  { %v2754_v51 = vpop.eup %2753 }
 0x75e   :  { %v1854_v30 = vadd.f32 1.0, %v2754_v51 }
 0x75f   :  { %v2756_v62 = vpop.eup %2755 }
 0x760   :  { %2759 = vrcp.f32 %v1854_v30  ;;  %v1863_v49 = vadd.f32 1.0, %v2756_v62  ;;  %v2758_v60 = vpop.eup %2757  ;;  %v654_v30 = vpop.xlane.xlu0 %653 }
 0x761   :  { %2761 = vtanh.f32 %v1866_v57  ;;  %v1874_v13 = vadd.f32 1.0, %v2758_v60  ;;  %v3454_v60 = vlaneseq }
 0x762   :  { %2763 = vrcp.f32 %v1863_v49  ;;  %v860_v49 = vpop.xlane.xlu1 %859 }
 0x763   :  { %2765 = vrcp.f32 %v1874_v13 }
 0x764   :  { %v1065_v62 = vpop.xlane.xlu0 %1064 }
 0x766   :  { %v1475_v13 = vpop.xlane.xlu1 %1474 }
 0x76a   :  { %v2760_v12 = vpop.eup %2759 }
 0x76b   :  { %v2762_v24 = vpop.eup %2761 }
 0x76c   :  { %v2764_v0 = vpop.eup %2763  ;;  %v1878_v9 = vmul.f32 %v2762_v24, %v2760_v12  ;;  %v382_v12 = vand.u32 127, %v3454_v60  ;;  %v655_v24 = vstv %s3438_s5  ;;  %s2840_s5 = smov [#allocation7]  }
 0x76d   :  { %v1877_v5 = vmul.f32 %v2764_v0, %v3350_v43  ;;  %v2766_v15 = vpop.eup %2765  ;;  %v137_v43 = vmul.f32 %v3040_v4, %v86_v34  ;;  %v1270_v0 = vpop.xlane.xlu0 %1269  ;;  %s2102_s8 = sshll.u32 %s2840_s5, 4  ;;  %s2103_s8 = int_to_ptr.vmem [resolvable:$true] %s2102_s8 }
 0x76e   :  { %vm657_vm1 = vcmp.eq.s32.totalorder %v382_v12, 0  ;;  %vm862_vm2 = vcmp.eq.s32.totalorder %v382_v12, 1  ;;  %vm1067_vm3 = vcmp.eq.s32.totalorder %v382_v12, 2  ;;  %vm1272_vm4 = vcmp.eq.s32.totalorder %v382_v12, 3  ;;  %s2808_s9 = scalar_lea.vmem %s2103_s8, 32  ;;  %p2813_p9 = scmp.lt.s32.totalorder %s2103_s8, %s2103_s8 }
 0x76f   :  { %v1879_v25 = vadd.f32 %v1878_v9, %v1877_v5  ;;  %v191_v56 = vadd.f32 %v3051_v16, %v137_v43  ;;  %v656_v5 = vadd.f32 %v655_v24, %v654_v30  ;;  %v861_v9 = vadd.f32 %v860_v49, %v655_v24  ;;  %p2809_p8 = scmp.ne.s32.totalorder %s2103_s8, %s2808_s9  ;;  %p2814_p10 = scmp.lt.s32.totalorder %s2808_s9, %s2808_s9 }
 0x770   :  { %vm1477_vm5 = vcmp.eq.s32.totalorder %v382_v12, 4  ;;  %vm1682_vm6 = vcmp.eq.s32.totalorder %v382_v12, 5  ;;  %vm1887_vm7 = vcmp.eq.s32.totalorder %v382_v12, 6  ;;  %vm2092_vm8 = vcmp.eq.s32.totalorder %v382_v12, 7 }
 0x771   :  { %2767 = vtanh.f32 %v1879_v25  ;;  %v346_v18 = vcombine.low %v191_v56, %v192_v61  ;;  %p2815_p11 = por %p2814_p10, %p2813_p9 }
 0x773   :  { %v354_v6 = vrot.slane %v346_v18, %v3067_v48  ;;  %p2816_p12 = pnand %p2815_p11, %p2809_p8 }
 0x775   :  { %v362_v36 = vcombine.low %v354_v6, %v361_v7 }
 0x77b   :  { %v2768_v33 = vpop.eup %2767 }
 0x77c   :  { %v1881_v35 = vmul.f32 %v2768_v33, %v2766_v15  ;;  %v1680_v15 = vpop.xlane.xlu0 %1679  ;;  %v1271_v33 = vadd.f32 %v1270_v0, %v655_v24 }
 0x77d   :  { %v1681_v34 = vadd.f32 %v1680_v15, %v655_v24 }
 0x77e   :  { %1956 = vmatmul.mubr.f32.vlgmr.msra.gmra.mrb[14].mxu0 %v1881_v35  ;;  %2027 = vmatmul.mubr.f32.vlgmr.msra.gmra.mrb[14].mxu1 %v1881_v35  ;;  %v1882_v26 = vmul.f32 %v2785_v44, %v1881_v35 }
 0x780   :  { %v1883_v31 = vsel %vm651_vm0, %v1882_v26, 0.0  ;;  %v1476_v26 = vadd.f32 %v1475_v13, %v655_v24 }
 0x781   :  { %1884 = vadd.xlane.f32.xlu1 %v1883_v31 }
 0x80e   :  { %v1885_v35 = vpop.xlane.xlu1 %1884 }
 0x80f   :  { %v1886_v55 = vadd.f32 %v1885_v35, %v655_v24 }
 0x851   :  { %v1957_v23 = vpop.f32.mrb[14].mxu0  ;;  %v2028_v27 = vpop.f32.mrb[14].mxu1 }
 0x852   :  { %v1959_v28 = vpop.f32.mrb[15].mxu0  ;;  %v2030_v4 = vpop.f32.mrb[15].mxu1 }
 0x853   :  { %v2037_v32 = vcombine.low %v1957_v23, %v1959_v28  ;;  %v2038_v11 = vcombine.low %v2028_v27, %v2030_v4 }
 0x855   :  { %v2045_v16 = vrot.slane %v2037_v32, %v3067_v48  ;;  %v2052_v20 = vrot.slane %v2038_v11, %v3067_v48 }
 0x857   :  { %v2053_v37 = vcombine.low %v2045_v16, %v2052_v20 }
 0x859   :  { %v2055_v40 = vadd.f32 %v2053_v37, %v362_v36 }
 0x85b   :  { %v2133_v63 = vmul.f32 -1.442695, %v2055_v40  ;;  %v2063_v41 = vrot.slane %v2055_v40, 2  ;;  %v2074_v52 = vrot.slane %v2055_v40, 6  ;;  %v2071_v58 = vrot.slane %v2055_v40, 4 }
 0x85d   :  { %2769 = vpow2.f32 %v2133_v63  ;;  %v2134_v45 = vmul.f32 -1.442695, %v2063_v41  ;;  %v2135_v53 = vmul.f32 -1.442695, %v2074_v52 }
 0x85f   :  { %2771 = vpow2.f32 %v2134_v45 }
 0x860   :  { %2773 = vpow2.f32 %v2135_v53 }
 0x867   :  { %v2770_v54 = vpop.eup %2769 }
 0x868   :  { %v2059_v1 = vadd.f32 1.0, %v2770_v54 }
 0x869   :  { %v2772_v2 = vpop.eup %2771 }
 0x86a   :  { %2775 = vrcp.f32 %v2059_v1  ;;  %v2068_v3 = vadd.f32 1.0, %v2772_v2  ;;  %v2774_v48 = vpop.eup %2773 }
 0x86b   :  { %2777 = vtanh.f32 %v2071_v58  ;;  %v2079_v22 = vadd.f32 1.0, %v2774_v48 }
 0x86c   :  { %2779 = vrcp.f32 %v2068_v3 }
 0x86d   :  { %2781 = vrcp.f32 %v2079_v22 }
 0x874   :  { %v2776_v8 = vpop.eup %2775 }
 0x875   :  { %v2778_v17 = vpop.eup %2777 }
 0x876   :  { %v2780_v21 = vpop.eup %2779  ;;  %v2083_v38 = vmul.f32 %v2778_v17, %v2776_v8 }
 0x877   :  { %v2082_v29 = vmul.f32 %v2780_v21, %v1879_v25  ;;  %v2782_v42 = vpop.eup %2781  ;;  %v1066_v25 = vadd.f32 %v1065_v62, %v655_v24 }
 0x879   :  { %v2084_v39 = vadd.f32 %v2083_v38, %v2082_v29 }
 0x87b   :  { %2783 = vtanh.f32 %v2084_v39 }
 0x885   :  { %v2784_v46 = vpop.eup %2783 }
 0x886   :  { %v2086_v50 = vmul.f32 %v2784_v46, %v2782_v42 }
 0x888   :  { %v2087_v51 = vmul.f32 %v2785_v44, %v2086_v50  ;;  %v658_v44 = vsel %vm657_vm1, %v656_v5, 0.0 }
 0x889   :  { %v863_v31 = vsel %vm862_vm2, %v861_v9, %v658_v44 }
 0x88a   :  { %v2088_v57 = vsel %vm651_vm0, %v2087_v51, 0.0  ;;  %v1068_v43 = vsel %vm1067_vm3, %v1066_v25, %v863_v31 }
 0x88b   :  { %2089 = vadd.xlane.f32.xlu0 %v2088_v57  ;;  %v1273_v47 = vsel %vm1272_vm4, %v1271_v33, %v1068_v43 }
 0x88c   :  { %v1478_v59 = vsel %vm1477_vm5, %v1476_v26, %v1273_v47 }
 0x88d   :  { %v1683_v61 = vsel %vm1682_vm6, %v1681_v34, %v1478_v59 }
 0x88e   :  { %v1888_v14 = vsel %vm1887_vm7, %v1886_v55, %v1683_v61 }
 0x918   :  { %v2090_v56 = vpop.xlane.xlu0 %2089 }
 0x919   :  { %v2091_v10 = vadd.f32 %v2090_v56, %v655_v24 }
 0x91b   :  { %v2093_v18 = vsel %vm2092_vm8, %v2091_v10, %v1888_v14 }
 0x91c   :  { %2095 = vst.msk [vmem:[#allocation7] sm:$0x3] %vm2094_vm9, %v2093_v18 }
 0x91d   :  { %2819 = shalt.err (!%p2816_p12)
}
 0x91e   :  { %s2820_s11 = scalar_lea.hbm %s3439_s6, 32 }
 0x91f   :  { %p2821_p13 = scmp.ne.s32.totalorder %s3439_s6, %s2820_s11  ;;  %p2824_p0 = scmp.lt.u32.totalorder %s2820_s11, %s3439_s6 }
 0x921   :  { %p2826_p1 = pnand %p2824_p0, %p2821_p13 }
 0x923   :  { %2829 = shalt.err (!%p2826_p1)
}
 0x924   :  { %2105 = dma.vmem_to_hbm [thread:$0]  %s2103_s8, 32, %s3439_s6, [#allocation6]  }
 0x925   :  { %2832 = dma.done.wait [#allocation6], 32  }
 0x926   :  { %2833 = vsyncadd [#allocation6], 4294967264 }
 0x927   :  { %2109 = vsyncpa [#allocation5], 1 }
 0x928   :  { %2110 = vsyncpa [#allocation6], 1 }

</bundles_post_ra>
